<compile_context>
chip_gen: v7x
topology: tpu7x:2x2x1
jax: 0.10.0
libtpu: 0.0.40
codegen_flags: <defaults>
</compile_context>

<pallas_src>
import jax
import jax.numpy as jnp
from jax.experimental import pallas as pl
from jax.experimental.pallas import tpu as pltpu

IN_DIM = 20
HID_DIM = 1000
OUT_DIM = 28 * 28          # 784
HID_PAD = 1024             # next multiple of 128
OUT_PAD = 896              # next multiple of 128


def _round_up(n, m):
    return ((n + m - 1) // m) * m


def mlp2hid_kernel(x_ref, w1_ref, b1_ref, w2_ref, b2_ref, o_ref):
    # x_ref:  (TB, 20)      f32  (cast to bf16 in-kernel for the MXU)
    # w1_ref: (20, 1024)    bf16
    # b1_ref: (1, 1024)     f32
    # w2_ref: (1024, 896)   bf16
    # b2_ref: (1, 896)      f32
    # o_ref:  (TB, 896)     f32
    x = x_ref[...].astype(jnp.bfloat16)
    h = jnp.dot(x, w1_ref[...], preferred_element_type=jnp.float32)
    h = jnp.maximum(h + b1_ref[...], 0.0)                      # bias + ReLU in f32
    y = jnp.dot(h.astype(jnp.bfloat16), w2_ref[...],
                preferred_element_type=jnp.float32)
    y = jnp.maximum(y + b2_ref[...], 0.0)
    o_ref[...] = y.astype(o_ref.dtype)


def mlp2hid_forward(x, w1, b1, w2, b2, *, block_b=256):
    """x: (B, ...) flattened to (B, 20). Returns (B, 1, 784) float32."""
    B = x.shape[0]
    x2d = x.reshape(B, -1).astype(jnp.float32)                 # nn.Flatten()
    assert x2d.shape[1] == IN_DIM, f"expected {IN_DIM} features, got {x2d.shape[1]}"

    # Zero-pad feature dims to multiples of 128. Padded hidden units have zero
    # weights AND zero bias -> relu(0)=0, so they contribute exactly 0 to layer
    # 2; padded output columns are sliced off below.
    w1p = jnp.pad(w1, ((0, 0), (0, HID_PAD - HID_DIM))).astype(jnp.bfloat16)
    b1p = jnp.pad(b1.reshape(1, -1).astype(jnp.float32),
                  ((0, 0), (0, HID_PAD - HID_DIM)))
    w2p = jnp.pad(w2, ((0, HID_PAD - HID_DIM), (0, OUT_PAD - OUT_DIM))).astype(jnp.bfloat16)
    b2p = jnp.pad(b2.reshape(1, -1).astype(jnp.float32),
                  ((0, 0), (0, OUT_PAD - OUT_DIM)))
    # TODO(synk): for a serving loop, pre-pad/pre-cast the weights once and keep
    # them VMEM-resident across calls (cross-pallas_call prefetch) instead of
    # re-DMAing ~1.9 MB of bf16 weights from HBM every call.

    # Batch tiling: TB rows per grid step (multiple of 8 sublanes).
    tb = min(block_b, _round_up(max(B, 1), 8))
    num_tiles = pl.cdiv(B, tb)
    b_pad = num_tiles * tb
    xp = jnp.pad(x2d, ((0, b_pad - B), (0, 0)))

    out = pl.pallas_call(
        mlp2hid_kernel,
        out_shape=jax.ShapeDtypeStruct((b_pad, OUT_PAD), jnp.float32),
        grid_spec=pltpu.PrefetchScalarGridSpec(
            num_scalar_prefetch=0,
            grid=(num_tiles,),
            in_specs=[
                pl.BlockSpec((tb, IN_DIM), lambda i: (i, 0)),
                # Weights/biases: constant block index -> fetched once and kept
                # VMEM-resident across the batch grid.
                pl.BlockSpec((IN_DIM, HID_PAD), lambda i: (0, 0)),
                pl.BlockSpec((1, HID_PAD), lambda i: (0, 0)),
                pl.BlockSpec((HID_PAD, OUT_PAD), lambda i: (0, 0)),
                pl.BlockSpec((1, OUT_PAD), lambda i: (0, 0)),
            ],
            out_specs=pl.BlockSpec((tb, OUT_PAD), lambda i: (i, 0)),
        ),
        compiler_params=pltpu.CompilerParams(
            dimension_semantics=("parallel",),   # batch tiles shard across TCs on v7x
            vmem_limit_bytes=32 << 20,
        ),
    )(xp, w1p, b1p, w2p, b2p)

    # logits.view(B, -1).unsqueeze(1) -> (B, 1, 784); drop batch/lane padding.
    return out[:B, :OUT_DIM].reshape(B, 1, OUT_DIM)


def init_params(key):
    """PyTorch nn.Linear default init: U[-1/sqrt(fan_in), 1/sqrt(fan_in)].
    Weights stored (in_features, out_features) so the kernel computes x @ W + b
    (equivalent to PyTorch's x @ W.T with its (out, in) storage)."""
    k1, k2, k3, k4 = jax.random.split(key, 4)
    bound1 = 1.0 / jnp.sqrt(IN_DIM)
    bound2 = 1.0 / jnp.sqrt(HID_DIM)
    w1 = jax.random.uniform(k1, (IN_DIM, HID_DIM), jnp.float32, -bound1, bound1)
    b1 = jax.random.uniform(k2, (HID_DIM,), jnp.float32, -bound1, bound1)
    w2 = jax.random.uniform(k3, (HID_DIM, OUT_DIM), jnp.float32, -bound2, bound2)
    b2 = jax.random.uniform(k4, (OUT_DIM,), jnp.float32, -bound2, bound2)
    return w1, b1, w2, b2


def _reference(x, w1, b1, w2, b2):
    """Pure-JAX reference mirroring the kernel's precision (bf16 matmuls,
    f32 accumulation / bias / ReLU)."""
    B = x.shape[0]
    xb = x.reshape(B, -1).astype(jnp.bfloat16)
    h = jnp.dot(xb, w1.astype(jnp.bfloat16), preferred_element_type=jnp.float32)
    h = jnp.maximum(h + b1[None, :], 0.0)
    y = jnp.dot(h.astype(jnp.bfloat16), w2.astype(jnp.bfloat16),
                preferred_element_type=jnp.float32)
    y = jnp.maximum(y + b2[None, :], 0.0)
    return y.reshape(B, 1, OUT_DIM)


if __name__ == "__main__":
    key = jax.random.PRNGKey(0)
    k_x, k_p = jax.random.split(key)

    B = 2
    x = jax.random.normal(k_x, (B, IN_DIM), jnp.float32)
    w1, b1, w2, b2 = init_params(k_p)

    out = mlp2hid_forward(x, w1, b1, w2, b2)
    out = jax.block_until_ready(out)

    ref = _reference(x, w1, b1, w2, b2)
    assert out.shape == (B, 1, OUT_DIM), out.shape
    assert jnp.allclose(out, ref, atol=1e-2, rtol=1e-2), "mismatch vs reference"

    print("KERNEL_OK")
</pallas_src>

<mosaic_0001>
module attributes {stable_mosaic.version = 11 : i64} {
  func.func @mlp2hid_kernel(%arg0: i32, %arg1: memref<8x20xf32, #tpu.memory_space<vmem>>, %arg2: memref<20x1024xbf16, #tpu.memory_space<vmem>>, %arg3: memref<1x1024xf32, #tpu.memory_space<vmem>>, %arg4: memref<1024x896xbf16, #tpu.memory_space<vmem>>, %arg5: memref<1x896xf32, #tpu.memory_space<vmem>>, %arg6: memref<8x896xf32, #tpu.memory_space<vmem>>) attributes {dimension_semantics = [#tpu.dimension_semantics<parallel>], iteration_bounds = array<i64: 1>, scalar_prefetch = 0 : i64, scratch_operands = 0 : i64, tpu.core_type = #tpu.core_type<tc>, window_params = [{transform_indices = @transform_0, window_bounds = array<i64: 8, 20>}, {pipeline_mode = #tpu.pipeline_mode<synchronous>, transform_indices = @transform_1, window_bounds = array<i64: 20, 1024>}, {pipeline_mode = #tpu.pipeline_mode<synchronous>, transform_indices = @transform_2, window_bounds = array<i64: 1, 1024>}, {pipeline_mode = #tpu.pipeline_mode<synchronous>, transform_indices = @transform_3, window_bounds = array<i64: 1024, 896>}, {pipeline_mode = #tpu.pipeline_mode<synchronous>, transform_indices = @transform_4, window_bounds = array<i64: 1, 896>}, {transform_indices = @transform_5, window_bounds = array<i64: 8, 896>}]} {
    %c0 = arith.constant 0 : index
    %c0_0 = arith.constant 0 : index
    %0 = vector.load %arg1[%c0, %c0_0] : memref<8x20xf32, #tpu.memory_space<vmem>>, vector<8x20xf32>
    %1 = arith.truncf %0 : vector<8x20xf32> to vector<8x20xbf16>
    %c0_1 = arith.constant 0 : index
    %c0_2 = arith.constant 0 : index
    %2 = vector.load %arg2[%c0_1, %c0_2] : memref<20x1024xbf16, #tpu.memory_space<vmem>>, vector<20x1024xbf16>
    %cst = arith.constant dense<0.000000e+00> : vector<8x1024xf32>
    %3 = tpu.matmul %1, %2, %cst {dimension_numbers = #tpu.dot_dimension_numbers<[1], [0], [0], [1], [0, 0, 1, 1], [], []>} : vector<8x20xbf16>, vector<20x1024xbf16>, vector<8x1024xf32> -> vector<8x1024xf32>
    %c0_3 = arith.constant 0 : index
    %c0_4 = arith.constant 0 : index
    %4 = vector.load %arg3[%c0_3, %c0_4] : memref<1x1024xf32, #tpu.memory_space<vmem>>, vector<1x1024xf32>
    %5 = vector.broadcast %4 : vector<1x1024xf32> to vector<8x1024xf32>
    %6 = arith.addf %3, %5 : vector<8x1024xf32>
    %cst_5 = arith.constant 0.000000e+00 : f32
    %7 = vector.broadcast %cst_5 : f32 to vector<8x1024xf32>
    %8 = arith.maximumf %6, %7 : vector<8x1024xf32>
    %9 = arith.truncf %8 : vector<8x1024xf32> to vector<8x1024xbf16>
    %c0_6 = arith.constant 0 : index
    %c0_7 = arith.constant 0 : index
    %10 = vector.load %arg4[%c0_6, %c0_7] : memref<1024x896xbf16, #tpu.memory_space<vmem>>, vector<1024x896xbf16>
    %cst_8 = arith.constant dense<0.000000e+00> : vector<8x896xf32>
    %11 = tpu.matmul %9, %10, %cst_8 {dimension_numbers = #tpu.dot_dimension_numbers<[1], [0], [0], [1], [0, 0, 1, 1], [], []>} : vector<8x1024xbf16>, vector<1024x896xbf16>, vector<8x896xf32> -> vector<8x896xf32>
    %c0_9 = arith.constant 0 : index
    %c0_10 = arith.constant 0 : index
    %12 = vector.load %arg5[%c0_9, %c0_10] : memref<1x896xf32, #tpu.memory_space<vmem>>, vector<1x896xf32>
    %13 = vector.broadcast %12 : vector<1x896xf32> to vector<8x896xf32>
    %14 = arith.addf %11, %13 : vector<8x896xf32>
    %cst_11 = arith.constant 0.000000e+00 : f32
    %15 = vector.broadcast %cst_11 : f32 to vector<8x896xf32>
    %16 = arith.maximumf %14, %15 : vector<8x896xf32>
    %c0_12 = arith.constant 0 : index
    %c0_13 = arith.constant 0 : index
    %17 = vector.load %arg6[%c0_12, %c0_13] : memref<8x896xf32, #tpu.memory_space<vmem>>, vector<8x896xf32>
    tpu.vector_store %arg6[%c0_12, %c0_13], %16 {strides = array<i32>} : memref<8x896xf32, #tpu.memory_space<vmem>>, vector<8x896xf32>,
    return
  }
  func.func @transform_0(%arg0: i32) -> (i32, i32) {
    %c0_i32 = arith.constant 0 : i32
    %c0_i32_0 = arith.constant 0 : i32
    return %arg0, %c0_i32 : i32, i32
  }
  func.func @transform_1(%arg0: i32) -> (i32, i32) {
    %c0_i32 = arith.constant 0 : i32
    %c0_i32_0 = arith.constant 0 : i32
    %c0_i32_1 = arith.constant 0 : i32
    return %c0_i32, %c0_i32_0 : i32, i32
  }
  func.func @transform_2(%arg0: i32) -> (i32, i32) {
    %c0_i32 = arith.constant 0 : i32
    %c0_i32_0 = arith.constant 0 : i32
    %c0_i32_1 = arith.constant 0 : i32
    return %c0_i32, %c0_i32_0 : i32, i32
  }
  func.func @transform_3(%arg0: i32) -> (i32, i32) {
    %c0_i32 = arith.constant 0 : i32
    %c0_i32_0 = arith.constant 0 : i32
    %c0_i32_1 = arith.constant 0 : i32
    return %c0_i32, %c0_i32_0 : i32, i32
  }
  func.func @transform_4(%arg0: i32) -> (i32, i32) {
    %c0_i32 = arith.constant 0 : i32
    %c0_i32_0 = arith.constant 0 : i32
    %c0_i32_1 = arith.constant 0 : i32
    return %c0_i32, %c0_i32_0 : i32, i32
  }
  func.func @transform_5(%arg0: i32) -> (i32, i32) {
    %c0_i32 = arith.constant 0 : i32
    %c0_i32_0 = arith.constant 0 : i32
    return %arg0, %c0_i32 : i32, i32
  }
}

</mosaic_0001>

<bundles_post_ra>
// kernel: tpu_custom_call.1
= control target key start
LH: loop header
LB: loop body
LE: loop exit
PB: predicated region body
PF: predicated region fallthrough
CT: control target
= control target key end

     0   :  { %10 = vsyncpa [#allocation3], 0  ;;  %s5589_s0 = inlined_call_operand.hbm [shape: f32[8,20], index: 0, kind: input, shape index: {}]   ;;  %s5590_s1 = inlined_call_operand.hbm [shape: bf16[20,1024], index: 1, kind: input, shape index: {}]   ;;  %s5591_s2 = inlined_call_operand.hbm [shape: f32[1,1024], index: 2, kind: input, shape index: {}]   ;;  %s5592_s3 = inlined_call_operand.hbm [shape: bf16[1024,896], index: 3, kind: input, shape index: {}]   ;;  %s5593_s4 = inlined_call_operand.hbm [shape: f32[1,896], index: 4, kind: input, shape index: {}]   ;;  %s5594_s5 = inlined_call_operand.hbm [shape: f32[8,896], index: 5, kind: output, shape index: {}]  }
   0x1   :  { %11 = vsyncpa [#allocation6], 0 }
   0x2   :  { %12 = vsyncpa [#allocation9], 0 }
   0x3   :  { %13 = vsyncpa [#allocation4], 0  ;;  %s5344_s18 = smov [#allocation5]   ;;  %s5204_s22 = scalar_lea.hbm %s5590_s1, 1536 }
   0x4   :  { %s29_s19 = sshll.u32 %s5344_s18, 4  ;;  %p5205_p0 = scmp.ne.s32.totalorder %s5590_s1, %s5204_s22  ;;  %s30_s19 = int_to_ptr.vmem [resolvable:$true] %s29_s19 }
   0x5   :  { %p5208_p1 = scmp.lt.u32.totalorder %s5204_s22, %s5590_s1 }
   0x7   :  { %p5210_p2 = pnand %p5208_p1, %p5205_p0 }
   0x9   :  { %5213 = shalt.err (!%p5210_p2)
}
   0xa   :  { %s5214_s27 = scalar_lea.vmem %s30_s19, 1536  ;;  %p5219_p4 = scmp.lt.s32.totalorder %s30_s19, %s30_s19 }
   0xb   :  { %p5215_p3 = scmp.ne.s32.totalorder %s30_s19, %s5214_s27  ;;  %p5220_p5 = scmp.lt.s32.totalorder %s5214_s27, %s5214_s27 }
   0xd   :  { %p5221_p6 = por %p5220_p5, %p5219_p4 }
   0xf   :  { %p5222_p7 = pnand %p5221_p6, %p5215_p3 }
  0x11   :  { %5225 = shalt.err (!%p5222_p7)
}
  0x12   :  { %s5345_s28 = smov 512   ;;  %s5346_s29 = smov 32  }
  0x13   :  { %35 = dma.hbm_to_vmem [thread:$0]  %s5590_s1, 1536, %s30_s19, [#allocation6], %s5345_s28, %s5345_s28, %s5346_s29  }
  0x14   :  { %s5347_s7 = smov [#allocation8]   ;;  %s5226_s11 = scalar_lea.hbm %s5592_s3, 57344 }
  0x15   :  { %s51_s8 = sshll.u32 %s5347_s7, 4  ;;  %p5227_p8 = scmp.ne.s32.totalorder %s5592_s3, %s5226_s11  ;;  %s52_s8 = int_to_ptr.vmem [resolvable:$true] %s51_s8 }
  0x16   :  { %p5230_p9 = scmp.lt.u32.totalorder %s5226_s11, %s5592_s3 }
  0x18   :  { %p5232_p10 = pnand %p5230_p9, %p5227_p8 }
  0x1a   :  { %5235 = shalt.err (!%p5232_p10)
}
  0x1b   :  { %s5236_s16 = scalar_lea.vmem %s52_s8, 57344  ;;  %p5241_p12 = scmp.lt.s32.totalorder %s52_s8, %s52_s8 }
  0x1c   :  { %p5237_p11 = scmp.ne.s32.totalorder %s52_s8, %s5236_s16  ;;  %p5242_p13 = scmp.lt.s32.totalorder %s5236_s16, %s5236_s16 }
  0x1e   :  { %p5243_p0 = por %p5242_p13, %p5241_p12 }
  0x20   :  { %p5244_p1 = pnand %p5243_p0, %p5237_p11 }
  0x22   :  { %5247 = shalt.err (!%p5244_p1)
}
  0x23   :  { %s5348_s1 = smov 448   ;;  %s5349_s17 = smov 28  }
  0x24   :  { %57 = dma.hbm_to_vmem [thread:$0]  %s5592_s3, 57344, %s52_s8, [#allocation9], %s5348_s1, %s5348_s1, %s5349_s17  }
  0x25   :  { %s5350_s20 = smov [#allocation2]   ;;  %s5351_s22 = smov [#allocation7]  }
  0x26   :  { %s20_s21 = sshll.u32 %s5350_s20, 4  ;;  %s42_s23 = sshll.u32 %s5351_s22, 4  ;;  %s21_s21 = int_to_ptr.vmem [resolvable:$true] %s20_s21  ;;  %s43_s23 = int_to_ptr.vmem [resolvable:$true] %s42_s23 }
  0x27   :  { %s5248_s26 = scalar_lea.hbm %s5589_s0, 128 }
  0x28   :  { %p5249_p2 = scmp.ne.s32.totalorder %s5589_s0, %s5248_s26  ;;  %p5252_p3 = scmp.lt.u32.totalorder %s5248_s26, %s5589_s0 }
  0x2a   :  { %p5254_p4 = pnand %p5252_p3, %p5249_p2 }
  0x2c   :  { %5257 = shalt.err (!%p5254_p4)
}
  0x2d   :  { %s5258_s3 = scalar_lea.vmem %s21_s21, 128  ;;  %p5263_p6 = scmp.lt.s32.totalorder %s21_s21, %s21_s21 }
  0x2e   :  { %p5259_p5 = scmp.ne.s32.totalorder %s21_s21, %s5258_s3  ;;  %p5264_p7 = scmp.lt.s32.totalorder %s5258_s3, %s5258_s3 }
  0x30   :  { %p5265_p8 = por %p5264_p7, %p5263_p6 }
  0x32   :  { %p5266_p9 = pnand %p5265_p8, %p5259_p5 }
  0x34   :  { %5269 = shalt.err (!%p5266_p9)
}
  0x35   :  { %23 = dma.hbm_to_vmem [thread:$0]  %s5589_s0, 128, %s21_s21, [#allocation3]  }
  0x36   :  { %s5270_s10 = scalar_lea.hbm %s5591_s2, 128 }
  0x37   :  { %p5271_p10 = scmp.ne.s32.totalorder %s5591_s2, %s5270_s10  ;;  %p5274_p11 = scmp.lt.u32.totalorder %s5270_s10, %s5591_s2 }
  0x39   :  { %p5276_p12 = pnand %p5274_p11, %p5271_p10 }
  0x3b   :  { %5279 = shalt.err (!%p5276_p12)
}
  0x3c   :  { %s5280_s15 = scalar_lea.vmem %s43_s23, 128  ;;  %p5285_p0 = scmp.lt.s32.totalorder %s43_s23, %s43_s23 }
  0x3d   :  { %p5281_p13 = scmp.ne.s32.totalorder %s43_s23, %s5280_s15  ;;  %p5286_p1 = scmp.lt.s32.totalorder %s5280_s15, %s5280_s15 }
  0x3f   :  { %p5287_p2 = por %p5286_p1, %p5285_p0 }
  0x41   :  { %p5288_p3 = pnand %p5287_p2, %p5281_p13 }
  0x43   :  { %5291 = shalt.err (!%p5288_p3)
}
  0x44   :  { %45 = dma.hbm_to_vmem [thread:$0]  %s5591_s2, 128, %s43_s23, [#allocation6]  }
  0x45   :  { %s5352_s1 = smov [#allocation10]   ;;  %s5292_s20 = scalar_lea.hbm %s5593_s4, 112 }
  0x46   :  { %s64_s17 = sshll.u32 %s5352_s1, 4  ;;  %p5293_p4 = scmp.ne.s32.totalorder %s5593_s4, %s5292_s20  ;;  %s65_s17 = int_to_ptr.vmem [resolvable:$true] %s64_s17 }
  0x47   :  { %p5296_p5 = scmp.lt.u32.totalorder %s5292_s20, %s5593_s4 }
  0x49   :  { %p5298_p6 = pnand %p5296_p5, %p5293_p4 }
  0x4b   :  { %5301 = shalt.err (!%p5298_p6)
}
  0x4c   :  { %s5302_s26 = scalar_lea.vmem %s65_s17, 112  ;;  %s5306_s2 = scalar_lea.vmem %s65_s17, 128 }
  0x4d   :  { %p5303_p7 = scmp.ne.s32.totalorder %s65_s17, %s5302_s26  ;;  %p5307_p8 = scmp.lt.s32.totalorder %s65_s17, %s65_s17 }
  0x4e   :  { %p5308_p9 = scmp.lt.s32.totalorder %s5306_s2, %s5302_s26 }
  0x50   :  { %p5309_p10 = por %p5308_p9, %p5307_p8 }
  0x52   :  { %p5310_p11 = pnand %p5309_p10, %p5303_p7 }
  0x54   :  { %5313 = shalt.err (!%p5310_p11)
}
  0x55   :  { %67 = dma.hbm_to_vmem [thread:$0]  %s5593_s4, 112, %s65_s17, [#allocation9]  }
  0x56   :  { %5336 = dma.done.wait [#allocation3], 128  }
  0x57   :  { %5337 = vsyncadd [#allocation3], 4294967168 }
  0x58   :  { %5338 = dma.done.wait [#allocation6], 1664  }
  0x59   :  { %5339 = vsyncadd [#allocation6], 4294965632 }
  0x5a   :  { %5340 = dma.done.wait [#allocation9], 57456  }
  0x5b   :  { %5341 = vsyncadd [#allocation9], 4294909840  ;;  %v5353_v0 = vmov 0   ;;  %v86_v1 = vld [vmem:[#allocation5] sm:$0xff]  ;;  %v87_v3 = vld [vmem:[#allocation5 + $0x8] sm:$0xff]  ;;  %vm204_vm0 = vcmask 1041408  }
  0x5c   :  { %261 = vmatprep.mubr.bf16.mxu0 %v5353_v0  ;;  %302 = vmatprep.mubr.bf16.mxu1 %v5353_v0  ;;  %v90_v2 = vld [vmem:[#allocation5 + $0x20] sm:$0xff]  ;;  %v91_v5 = vld [vmem:[#allocation5 + $0x28] sm:$0xff]  ;;  %v88_v13 = vld [vmem:[#allocation5 + $0x10] sm:$0xff]  ;;  %vm200_vm1 = vcmask 162816   ;;  %s5354_s4 = smov [#allocation11]  }
  0x5d   :  { %v3946_v4 = vcombine.high %v86_v1, %v90_v2  ;;  %v3945_v6 = vcombine.low %v86_v1, %v90_v2  ;;  %v94_v7 = vld [vmem:[#allocation5 + $0x40] sm:$0x33]  ;;  %v95_v8 = vld [vmem:[#allocation5 + $0x48] sm:$0x33]  ;;  %v3948_v9 = vcombine.high %v87_v3, %v91_v5  ;;  %v3947_v10 = vcombine.low %v87_v3, %v91_v5  ;;  %v92_v14 = vld [vmem:[#allocation5 + $0x30] sm:$0xff]  ;;  %s3934_s28 = sshll.u32 %s5354_s4, 4  ;;  %s3935_s28 = int_to_ptr.vmem [resolvable:$true] %s3934_s28 }
  0x5e   :  { %v3954_v11 = vcombine.high %v94_v7, %v94_v7  ;;  %v3956_v12 = vcombine.high %v95_v8, %v95_v8  ;;  %v3953_v15 = vcombine.low %v94_v7, %v94_v7  ;;  %v3955_v16 = vcombine.low %v95_v8, %v95_v8  ;;  %v89_v17 = vld [vmem:[#allocation5 + $0x18] sm:$0xff]  ;;  %v96_v23 = vld [vmem:[#allocation5 + $0x50] sm:$0x33]  ;;  %v4569_v34 = vld [vmem:[#allocation8 + $0x384] ss:$28 sps:$4 sm:$0xff]   ;;  %s5314_s29 = scalar_lea.vmem %s3935_s28, 896  ;;  %p5319_p13 = scmp.lt.s32.totalorder %s3935_s28, %s3935_s28 }
  0x5f   :  { %229 = vmatprep.subr.bf16.mxu0 %v3946_v4  ;;  %v93_v18 = vld [vmem:[#allocation5 + $0x38] sm:$0xff]  ;;  %270 = vmatprep.subr.bf16.mxu1 %v3948_v9  ;;  %v3950_v21 = vcombine.high %v88_v13, %v92_v14  ;;  %v3949_v26 = vcombine.low %v88_v13, %v92_v14  ;;  %v3958_v28 = vcombine.high %v96_v23, %v96_v23  ;;  %v4566_v36 = vld [vmem:[#allocation8 + $0x4] ss:$28 sps:$4 sm:$0xff]   ;;  %v4575_v38 = vld [vmem:[#allocation8 + $0x3bc] ss:$28 sps:$4 sm:$0xff]   ;;  %p5315_p12 = scmp.ne.s32.totalorder %s3935_s28, %s5314_s29  ;;  %p5320_p0 = scmp.lt.s32.totalorder %s5314_s29, %s5314_s29 }
  0x60   :  { %230 = vmatpush1.bf16.msra.mxu0 %v3945_v6  ;;  %v84_v19 = vld [vmem:[#allocation2] sm:$0xff]  ;;  %271 = vmatpush1.bf16.msra.mxu1 %v3947_v10  ;;  %v206_v20 = vsel %vm204_vm0, %v3953_v15, 0  ;;  %v212_v22 = vsel %vm204_vm0, %v3955_v16, 0  ;;  %v3952_v24 = vcombine.high %v89_v17, %v93_v18  ;;  %v3957_v29 = vcombine.low %v96_v23, %v96_v23  ;;  %v4567_v37 = vld [vmem:[#allocation8 + $0x380] ss:$28 sps:$4 sm:$0xff]  }
  0x61   :  { %3961 = vmatprep.subr.msk.bf16.mxu0 %vm204_vm0, %v3954_v11  ;;  %3963 = vmatprep.subr.msk.bf16.mxu1 %vm204_vm0, %v3956_v12  ;;  %v85_v25 = vpack.c.bf16 %v84_v19, %v84_v19  ;;  %v97_v27 = vld [vmem:[#allocation5 + $0x58] sm:$0x33]  ;;  %v3951_v30 = vcombine.low %v89_v17, %v93_v18  ;;  %v4564_v39 = vld [vmem:[#allocation8] ss:$28 sps:$4 sm:$0xff]   ;;  %v4587_v46 = vld [vmem:[#allocation8 + $0x42c] ss:$28 sps:$4 sm:$0xff]   ;;  %p5321_p1 = por %p5320_p0, %p5319_p13 }
  0x62   :  { %v3960_v31 = vcombine.high %v97_v27, %v97_v27  ;;  %v3959_v32 = vcombine.low %v97_v27, %v97_v27  ;;  %v218_v33 = vsel %vm204_vm0, %v3957_v29, 0  ;;  %v4572_v40 = vld [vmem:[#allocation8 + $0x3c] ss:$28 sps:$4 sm:$0xff]   ;;  %v4581_v42 = vld [vmem:[#allocation8 + $0x3f4] ss:$28 sps:$4 sm:$0xff]  }
  0x63   :  { %v4573_v41 = vld [vmem:[#allocation8 + $0x3b8] ss:$28 sps:$4 sm:$0xff]   ;;  %v4579_v45 = vld [vmem:[#allocation8 + $0x3f0] ss:$28 sps:$4 sm:$0xff]   ;;  %v4585_v49 = vld [vmem:[#allocation8 + $0x428] ss:$28 sps:$4 sm:$0xff]   ;;  %p5322_p2 = pnand %p5321_p1, %p5315_p12 }
  0x64   :  { %232 = vmatpush1.bf16.msra.mxu0 %v206_v20  ;;  %273 = vmatpush1.bf16.msra.mxu1 %v212_v22  ;;  %v224_v35 = vsel %vm204_vm0, %v3959_v32, 0  ;;  %v4570_v43 = vld [vmem:[#allocation8 + $0x38] ss:$28 sps:$4 sm:$0xff]   ;;  %v4576_v47 = vld [vmem:[#allocation8 + $0x70] ss:$28 sps:$4 sm:$0xff]  }
  0x65   :  { %311 = vmatprep.subr.bf16.mxu0 %v3950_v21  ;;  %352 = vmatprep.subr.bf16.mxu1 %v3952_v24  ;;  %v4578_v44 = vld [vmem:[#allocation8 + $0x74] ss:$28 sps:$4 sm:$0xff]   ;;  %v4584_v48 = vld [vmem:[#allocation8 + $0xac] ss:$28 sps:$4 sm:$0xff]   ;;  %v4593_v50 = vld [vmem:[#allocation8 + $0x464] ss:$28 sps:$4 sm:$0xff]  }
  0x66   :  { %v4582_v51 = vld [vmem:[#allocation8 + $0xa8] ss:$28 sps:$4 sm:$0xff]   ;;  %v4591_v53 = vld [vmem:[#allocation8 + $0x460] ss:$28 sps:$4 sm:$0xff]   ;;  %v4597_v57 = vld [vmem:[#allocation8 + $0x498] ss:$28 sps:$4 sm:$0xff]  }
  0x67   :  { %3962 = vmatmul.mubr.msk.bf16.vlgmr.msra.gmra.mrb[0].mxu0 %vm200_vm1, %v85_v25  ;;  %3964 = vmatmul.mubr.msk.bf16.vlgmr.msra.gmra.mrb[0].mxu1 %vm200_vm1, %v85_v25  ;;  %v4590_v52 = vld [vmem:[#allocation8 + $0xe4] ss:$28 sps:$4 sm:$0xff]   ;;  %v4599_v54 = vld [vmem:[#allocation8 + $0x49c] ss:$28 sps:$4 sm:$0xff]   ;;  %v4605_v58 = vld [vmem:[#allocation8 + $0x4d4] ss:$28 sps:$4 sm:$0xff]  }
  0x68   :  { %312 = vmatpush1.bf16.msra.mxu0 %v3949_v26  ;;  %343 = vmatprep.mubr.bf16.mxu0 %v5353_v0  ;;  %v4588_v55 = vld [vmem:[#allocation8 + $0xe0] ss:$28 sps:$4 sm:$0xff]   ;;  %v4594_v59 = vld [vmem:[#allocation8 + $0x118] ss:$28 sps:$4 sm:$0xff]   ;;  %v4600_v61 = vld [vmem:[#allocation8 + $0x150] ss:$28 sps:$4 sm:$0xff]  }
  0x69   :  { %3965 = vmatprep.subr.msk.bf16.mxu0 %vm204_vm0, %v3958_v28  ;;  %353 = vmatpush1.bf16.msra.mxu1 %v3951_v30  ;;  %v4596_v56 = vld [vmem:[#allocation8 + $0x11c] ss:$28 sps:$4 sm:$0xff]   ;;  %v4602_v60 = vld [vmem:[#allocation8 + $0x154] ss:$28 sps:$4 sm:$0xff]   ;;  %v4608_v63 = vld [vmem:[#allocation8 + $0x18c] ss:$28 sps:$4 sm:$0xff]  }
  0x6a   :  { %384 = vmatprep.mubr.bf16.mxu1 %v5353_v0  ;;  %3967 = vmatprep.subr.msk.bf16.mxu1 %vm204_vm0, %v3960_v31  ;;  %v4603_v62 = vld [vmem:[#allocation8 + $0x4d0] ss:$28 sps:$4 sm:$0xff]   ;;  %v4609_v1 = vld [vmem:[#allocation8 + $0x508] ss:$28 sps:$4 sm:$0xff]   ;;  %v4615_v5 = vld [vmem:[#allocation8 + $0x540] ss:$28 sps:$4 sm:$0xff]  }
  0x6b   :  { %v4611_v0 = vld [vmem:[#allocation8 + $0x50c] ss:$28 sps:$4 sm:$0xff]   ;;  %v4617_v2 = vld [vmem:[#allocation8 + $0x544] ss:$28 sps:$4 sm:$0xff]   ;;  %v4623_v6 = vld [vmem:[#allocation8 + $0x57c] ss:$28 sps:$4 sm:$0xff]  }
  0x6c   :  { %314 = vmatpush1.bf16.msra.mxu0 %v218_v33  ;;  %v4606_v3 = vld [vmem:[#allocation8 + $0x188] ss:$28 sps:$4 sm:$0xff]   ;;  %v4612_v7 = vld [vmem:[#allocation8 + $0x1c0] ss:$28 sps:$4 sm:$0xff]   ;;  %v4621_v9 = vld [vmem:[#allocation8 + $0x578] ss:$28 sps:$4 sm:$0xff]  }
  0x6d   :  { %3303 = vmatprep.subr.bf16.mxu0 %v4569_v34  ;;  %355 = vmatpush1.bf16.msra.mxu1 %v224_v35  ;;  %v4614_v4 = vld [vmem:[#allocation8 + $0x1c4] ss:$28 sps:$4 sm:$0xff]   ;;  %v4620_v8 = vld [vmem:[#allocation8 + $0x1fc] ss:$28 sps:$4 sm:$0xff]   ;;  %v4629_v10 = vld [vmem:[#allocation8 + $0x5b4] ss:$28 sps:$4 sm:$0xff]  }
  0x6e   :  { %3262 = vmatprep.subr.bf16.mxu1 %v4566_v36  ;;  %v4618_v11 = vld [vmem:[#allocation8 + $0x1f8] ss:$28 sps:$4 sm:$0xff]   ;;  %v4627_v13 = vld [vmem:[#allocation8 + $0x5b0] ss:$28 sps:$4 sm:$0xff]   ;;  %v4633_v17 = vld [vmem:[#allocation8 + $0x5e8] ss:$28 sps:$4 sm:$0xff]  }
  0x6f   :  { %3966 = vmatmul.mubr.msk.bf16.vlgmr.msra.gmra.mrb[4].mxu0 %vm200_vm1, %v85_v25  ;;  %v4626_v12 = vld [vmem:[#allocation8 + $0x234] ss:$28 sps:$4 sm:$0xff]   ;;  %v4635_v14 = vld [vmem:[#allocation8 + $0x5ec] ss:$28 sps:$4 sm:$0xff]   ;;  %v4641_v18 = vld [vmem:[#allocation8 + $0x624] ss:$28 sps:$4 sm:$0xff]  }
  0x70   :  { %3304 = vmatpush1.bf16.msra.mxu0 %v4567_v37  ;;  %3968 = vmatmul.mubr.msk.bf16.vlgmr.msra.gmra.mrb[4].mxu1 %vm200_vm1, %v85_v25  ;;  %v4624_v15 = vld [vmem:[#allocation8 + $0x230] ss:$28 sps:$4 sm:$0xff]   ;;  %v4630_v19 = vld [vmem:[#allocation8 + $0x268] ss:$28 sps:$4 sm:$0xff]   ;;  %v4639_v21 = vld [vmem:[#allocation8 + $0x620] ss:$28 sps:$4 sm:$0xff]   ;;  %v100_v37 = vlaneseq }
  0x71   :  { %3305 = vmatprep.subr.bf16.mxu0 %v4575_v38  ;;  %3263 = vmatpush1.bf16.msra.mxu1 %v4564_v39  ;;  %v4632_v16 = vld [vmem:[#allocation8 + $0x26c] ss:$28 sps:$4 sm:$0xff]   ;;  %v4638_v20 = vld [vmem:[#allocation8 + $0x2a4] ss:$28 sps:$4 sm:$0xff]   ;;  %v4647_v22 = vld [vmem:[#allocation8 + $0x65c] ss:$28 sps:$4 sm:$0xff]  }
  0x72   :  { %3264 = vmatprep.subr.bf16.mxu1 %v4572_v40  ;;  %v4636_v23 = vld [vmem:[#allocation8 + $0x2a0] ss:$28 sps:$4 sm:$0xff]   ;;  %v4645_v25 = vld [vmem:[#allocation8 + $0x658] ss:$28 sps:$4 sm:$0xff]   ;;  %v4648_v29 = vld [vmem:[#allocation8 + $0x310] ss:$28 sps:$4 sm:$0xff]  }
  0x73   :  { %v4644_v24 = vld [vmem:[#allocation8 + $0x2dc] ss:$28 sps:$4 sm:$0xff]   ;;  %v4650_v27 = vld [vmem:[#allocation8 + $0x314] ss:$28 sps:$4 sm:$0xff]   ;;  %v4656_v31 = vld [vmem:[#allocation8 + $0x34c] ss:$28 sps:$4 sm:$0xff]  }
  0x74   :  { %3306 = vmatpush1.bf16.msra.mxu0 %v4573_v41  ;;  %v4642_v26 = vld [vmem:[#allocation8 + $0x2d8] ss:$28 sps:$4 sm:$0xff]   ;;  %v4651_v30 = vld [vmem:[#allocation8 + $0x690] ss:$28 sps:$4 sm:$0xff]   ;;  %v4654_v33 = vld [vmem:[#allocation8 + $0x348] ss:$28 sps:$4 sm:$0xff]  }
  0x75   :  { %3307 = vmatprep.subr.bf16.mxu0 %v4581_v42  ;;  %3265 = vmatpush1.bf16.msra.mxu1 %v4570_v43  ;;  %v4653_v28 = vld [vmem:[#allocation8 + $0x694] ss:$28 sps:$4 sm:$0xff]   ;;  %v4659_v32 = vld [vmem:[#allocation8 + $0x6cc] ss:$28 sps:$4 sm:$0xff]   ;;  %v4662_v35 = vld [vmem:[#allocation8 + $0x704] ss:$28 sps:$4 sm:$0xff]  }
  0x76   :  { %3266 = vmatprep.subr.bf16.mxu1 %v4578_v44  ;;  %v4657_v34 = vld [vmem:[#allocation8 + $0x6c8] ss:$28 sps:$4 sm:$0xff]   ;;  %v5457_v38 = vshrl.u32 %v100_v37, 7  ;;  %v5459_v39 = vld [vmem:[#allocation7] sm:$0xff] }
  0x77   :  { %v4665_v36 = vld [vmem:[#allocation8 + $0xc] ss:$28 sps:$4 sm:$0xff]   ;;  %v4693_v37 = vld [vmem:[#allocation8 + $0x120] ss:$28 sps:$4 sm:$0xff]  }
  0x78   :  { %3308 = vmatpush1.bf16.msra.mxu0 %v4579_v45  ;;  %v102_v40 = vsub.s32 0, %v5457_v38  ;;  %v110_v41 = vsub.s32 2, %v5457_v38  ;;  %v106_v42 = vsub.s32 1, %v5457_v38  ;;  %v114_v43 = vsub.s32 3, %v5457_v38 }
  0x79   :  { %3309 = vmatprep.subr.bf16.mxu0 %v4587_v46  ;;  %3267 = vmatpush1.bf16.msra.mxu1 %v4576_v47 }
  0x7a   :  { %3268 = vmatprep.subr.bf16.mxu1 %v4584_v48  ;;  %v103_v44 = vrot.slane %v5459_v39, %v102_v40  ;;  %v111_v45 = vrot.slane %v5459_v39, %v110_v41  ;;  %v107_v46 = vrot.slane %v5459_v39, %v106_v42  ;;  %v115_v47 = vrot.slane %v5459_v39, %v114_v43 }
  0x7c   :  { %3310 = vmatpush1.bf16.msra.mxu0 %v4585_v49  ;;  %v122_v49 = vsub.s32 5, %v5457_v38 }
  0x7d   :  { %3311 = vmatprep.subr.bf16.mxu0 %v4593_v50  ;;  %3269 = vmatpush1.bf16.msra.mxu1 %v4582_v51 }
  0x7e   :  { %3270 = vmatprep.subr.bf16.mxu1 %v4590_v52 }
  0x80   :  { %3312 = vmatpush1.bf16.msra.mxu0 %v4591_v53 }
  0x81   :  { %3313 = vmatprep.subr.bf16.mxu0 %v4599_v54  ;;  %3271 = vmatpush1.bf16.msra.mxu1 %v4588_v55 }
  0x82   :  { %3272 = vmatprep.subr.bf16.mxu1 %v4596_v56 }
  0x84   :  { %3314 = vmatpush1.bf16.msra.mxu0 %v4597_v57 }
  0x85   :  { %3315 = vmatprep.subr.bf16.mxu0 %v4605_v58  ;;  %3273 = vmatpush1.bf16.msra.mxu1 %v4594_v59 }
  0x86   :  { %3274 = vmatprep.subr.bf16.mxu1 %v4602_v60 }
  0x88   :  { %3316 = vmatpush1.bf16.msra.mxu0 %v4603_v62 }
  0x89   :  { %3317 = vmatprep.subr.bf16.mxu0 %v4611_v0  ;;  %3275 = vmatpush1.bf16.msra.mxu1 %v4600_v61 }
  0x8a   :  { %3276 = vmatprep.subr.bf16.mxu1 %v4608_v63 }
  0x8c   :  { %3318 = vmatpush1.bf16.msra.mxu0 %v4609_v1  ;;  %v4660_v1 = vld [vmem:[#allocation8 + $0x700] ss:$28 sps:$4 sm:$0xff]  }
  0x8d   :  { %3319 = vmatprep.subr.bf16.mxu0 %v4617_v2  ;;  %3277 = vmatpush1.bf16.msra.mxu1 %v4606_v3  ;;  %v4663_v2 = vld [vmem:[#allocation8 + $0x8] ss:$28 sps:$4 sm:$0xff]  }
  0x8e   :  { %3278 = vmatprep.subr.bf16.mxu1 %v4614_v4 }
  0x90   :  { %3320 = vmatpush1.bf16.msra.mxu0 %v4615_v5  ;;  %v123_v5 = vrot.slane %v5459_v39, %v122_v49 }
  0x91   :  { %3321 = vmatprep.subr.bf16.mxu0 %v4623_v6  ;;  %3279 = vmatpush1.bf16.msra.mxu1 %v4612_v7 }
  0x92   :  { %3280 = vmatprep.subr.bf16.mxu1 %v4620_v8  ;;  %v4668_v8 = vld [vmem:[#allocation8 + $0x73c] ss:$28 sps:$4 sm:$0xff]  }
  0x94   :  { %3322 = vmatpush1.bf16.msra.mxu0 %v4621_v9  ;;  %v4671_v9 = vld [vmem:[#allocation8 + $0x44] ss:$28 sps:$4 sm:$0xff]  }
  0x95   :  { %3323 = vmatprep.subr.bf16.mxu0 %v4629_v10  ;;  %3281 = vmatpush1.bf16.msra.mxu1 %v4618_v11  ;;  %v4666_v11 = vld [vmem:[#allocation8 + $0x738] ss:$28 sps:$4 sm:$0xff]  }
  0x96   :  { %3282 = vmatprep.subr.bf16.mxu1 %v4626_v12  ;;  %v4669_v12 = vld [vmem:[#allocation8 + $0x40] ss:$28 sps:$4 sm:$0xff]  }
  0x98   :  { %3324 = vmatpush1.bf16.msra.mxu0 %v4627_v13  ;;  %v4677_v13 = vld [vmem:[#allocation8 + $0x7c] ss:$28 sps:$4 sm:$0xff]  }
  0x99   :  { %3325 = vmatprep.subr.bf16.mxu0 %v4635_v14  ;;  %3283 = vmatpush1.bf16.msra.mxu1 %v4624_v15 }
  0x9a   :  { %3284 = vmatprep.subr.bf16.mxu1 %v4632_v16 }
  0x9c   :  { %3326 = vmatpush1.bf16.msra.mxu0 %v4633_v17 }
  0x9d   :  { %3327 = vmatprep.subr.bf16.mxu0 %v4641_v18  ;;  %3285 = vmatpush1.bf16.msra.mxu1 %v4630_v19 }
  0x9e   :  { %3286 = vmatprep.subr.bf16.mxu1 %v4638_v20  ;;  %v4674_v20 = vld [vmem:[#allocation8 + $0x774] ss:$28 sps:$4 sm:$0xff]  }
  0xa0   :  { %3328 = vmatpush1.bf16.msra.mxu0 %v4639_v21 }
  0xa1   :  { %3329 = vmatprep.subr.bf16.mxu0 %v4647_v22  ;;  %3287 = vmatpush1.bf16.msra.mxu1 %v4636_v23  ;;  %v4675_v23 = vld [vmem:[#allocation8 + $0x78] ss:$28 sps:$4 sm:$0xff]  }
  0xa2   :  { %3288 = vmatprep.subr.bf16.mxu1 %v4644_v24 }
  0xa4   :  { %3330 = vmatpush1.bf16.msra.mxu0 %v4645_v25 }
  0xa5   :  { %3289 = vmatpush1.bf16.msra.mxu1 %v4642_v26  ;;  %3331 = vmatprep.subr.bf16.mxu0 %v4653_v28  ;;  %v4672_v26 = vld [vmem:[#allocation8 + $0x770] ss:$28 sps:$4 sm:$0xff]  }
  0xa6   :  { %3290 = vmatprep.subr.bf16.mxu1 %v4650_v27  ;;  %v4680_v27 = vld [vmem:[#allocation8 + $0x7ac] ss:$28 sps:$4 sm:$0xff]   ;;  %v4683_v28 = vld [vmem:[#allocation8 + $0xb4] ss:$28 sps:$4 sm:$0xff]  }
  0xa8   :  { %3332 = vmatpush1.bf16.msra.mxu0 %v4651_v30  ;;  %v4678_v30 = vld [vmem:[#allocation8 + $0x7a8] ss:$28 sps:$4 sm:$0xff]  }
  0xa9   :  { %3291 = vmatpush1.bf16.msra.mxu1 %v4648_v29  ;;  %3333 = vmatprep.subr.bf16.mxu0 %v4659_v32  ;;  %v4681_v29 = vld [vmem:[#allocation8 + $0xb0] ss:$28 sps:$4 sm:$0xff]  }
  0xaa   :  { %3292 = vmatprep.subr.bf16.mxu1 %v4656_v31  ;;  %v4686_v31 = vld [vmem:[#allocation8 + $0x7e4] ss:$28 sps:$4 sm:$0xff]   ;;  %v4689_v32 = vld [vmem:[#allocation8 + $0xec] ss:$28 sps:$4 sm:$0xff]  }
  0xac   :  { %3334 = vmatpush1.bf16.msra.mxu0 %v4657_v34  ;;  %v4684_v34 = vld [vmem:[#allocation8 + $0x7e0] ss:$28 sps:$4 sm:$0xff]  }
  0xad   :  { %3293 = vmatpush1.bf16.msra.mxu1 %v4654_v33  ;;  %3344 = vmatprep.subr.bf16.mxu0 %v4662_v35  ;;  %v4687_v33 = vld [vmem:[#allocation8 + $0xe8] ss:$28 sps:$4 sm:$0xff]   ;;  %v4692_v35 = vld [vmem:[#allocation8 + $0x81c] ss:$28 sps:$4 sm:$0xff]  }
  0xae   :  { %3426 = vmatprep.subr.bf16.mxu1 %v4665_v36  ;;  %v4695_v36 = vld [vmem:[#allocation8 + $0x124] ss:$28 sps:$4 sm:$0xff]  }
 0x13a   :  { %v263_v48 = vpop.f32.mrb[0].mxu0  ;;  %v304_v51 = vpop.f32.mrb[0].mxu1 }
 0x13b   :  { %v264_v50 = vadd.f32 %v263_v48, %v103_v44  ;;  %v265_v52 = vpop.f32.mrb[1].mxu0  ;;  %v305_v53 = vadd.f32 %v304_v51, %v111_v45  ;;  %v306_v55 = vpop.f32.mrb[1].mxu1  ;;  %v4690_v44 = vld [vmem:[#allocation8 + $0x818] ss:$28 sps:$4 sm:$0xff]   ;;  %v4696_v48 = vld [vmem:[#allocation8 + $0x850] ss:$28 sps:$4 sm:$0xff]  }
 0x13c   :  { %v266_v54 = vadd.f32 %v265_v52, %v107_v46  ;;  %v267_v56 = vpop.f32.mrb[2].mxu0  ;;  %v307_v58 = vadd.f32 %v306_v55, %v115_v47  ;;  %v308_v59 = vpop.f32.mrb[2].mxu1  ;;  %v4701_v45 = vld [vmem:[#allocation8 + $0x15c] ss:$28 sps:$4 sm:$0xff]   ;;  %v4698_v46 = vld [vmem:[#allocation8 + $0x854] ss:$28 sps:$4 sm:$0xff]  }
 0x13d   :  { %v393_v57 = vmax.f32 %v264_v50, 0.0  ;;  %v268_v60 = vpop.f32.mrb[3].mxu0  ;;  %v395_v61 = vmax.f32 %v305_v53, 0.0  ;;  %v309_v63 = vpop.f32.mrb[3].mxu1  ;;  %v4699_v47 = vld [vmem:[#allocation8 + $0x158] ss:$28 sps:$4 sm:$0xff]  }
 0x13e   :  { %v394_v62 = vmax.f32 %v266_v54, 0.0  ;;  %v396_v0 = vmax.f32 %v307_v58, 0.0  ;;  %v4707_v50 = vld [vmem:[#allocation8 + $0x194] ss:$28 sps:$4 sm:$0xff]   ;;  %v4704_v51 = vld [vmem:[#allocation8 + $0x88c] ss:$28 sps:$4 sm:$0xff]  }
 0x13f   :  { %v5478_v3 = vpack.c.bf16 %v395_v61, %v395_v61  ;;  %v5485_v6 = vpack.c.bf16 %v393_v57, %v393_v57  ;;  %v4705_v52 = vld [vmem:[#allocation8 + $0x190] ss:$28 sps:$4 sm:$0xff]   ;;  %v4702_v53 = vld [vmem:[#allocation8 + $0x888] ss:$28 sps:$4 sm:$0xff]   ;;  %v4708_v57 = vld [vmem:[#allocation8 + $0x8c0] ss:$28 sps:$4 sm:$0xff]  }
 0x140   :  { %v5480_v4 = vpack.c.bf16 %v394_v62, %v394_v62  ;;  %v5487_v7 = vpack.c.bf16 %v396_v0, %v396_v0  ;;  %v4713_v54 = vld [vmem:[#allocation8 + $0x1cc] ss:$28 sps:$4 sm:$0xff]   ;;  %v4710_v55 = vld [vmem:[#allocation8 + $0x8c4] ss:$28 sps:$4 sm:$0xff]   ;;  %v4716_v59 = vld [vmem:[#allocation8 + $0x8fc] ss:$28 sps:$4 sm:$0xff]  }
 0x141   :  { %v4711_v56 = vld [vmem:[#allocation8 + $0x1c8] ss:$28 sps:$4 sm:$0xff]   ;;  %v4717_v60 = vld [vmem:[#allocation8 + $0x200] ss:$28 sps:$4 sm:$0xff]   ;;  %v4714_v61 = vld [vmem:[#allocation8 + $0x8f8] ss:$28 sps:$4 sm:$0xff]  }
 0x142   :  { %3294 = vmatprep.mubr.bf16.mxu1 %v5480_v4  ;;  %v5490_v10 = vpop.f32.mrb[4].mxu0  ;;  %3335 = vmatprep.mubr.bf16.mxu0 %v5487_v7  ;;  %v4719_v58 = vld [vmem:[#allocation8 + $0x204] ss:$28 sps:$4 sm:$0xff]   ;;  %v4725_v62 = vld [vmem:[#allocation8 + $0x23c] ss:$28 sps:$4 sm:$0xff]  }
 0x143   :  { %3295 = vmatmul.mubr.bf16.vlgmr.msra.gmra.mrb[8].mxu1 %v5485_v6  ;;  %v347_v14 = vpop.f32.mrb[5].mxu0  ;;  %3336 = vmatmul.mubr.bf16.vlgmr.msra.gmra.mrb[8].mxu0 %v5478_v3  ;;  %v5495_v17 = vpop.f32.mrb[4].mxu1  ;;  %v4722_v63 = vld [vmem:[#allocation8 + $0x934] ss:$28 sps:$4 sm:$0xff]  }
 0x144   :  { %3427 = vmatpush1.bf16.msra.mxu1 %v4663_v2  ;;  %v348_v15 = vadd.f32 %v347_v14, %v123_v5  ;;  %v349_v16 = vpop.f32.mrb[6].mxu0  ;;  %3345 = vmatpush1.bf16.msra.mxu0 %v4660_v1  ;;  %v5498_v19 = vpop.f32.mrb[5].mxu1  ;;  %v4723_v0 = vld [vmem:[#allocation8 + $0x238] ss:$28 sps:$4 sm:$0xff]   ;;  %v4720_v1 = vld [vmem:[#allocation8 + $0x930] ss:$28 sps:$4 sm:$0xff]  }
 0x145   :  { %3458 = vmatprep.mubr.bf16.mxu1 %v5480_v4  ;;  %v350_v18 = vpop.f32.mrb[7].mxu0  ;;  %3346 = vmatprep.subr.bf16.mxu0 %v4668_v8  ;;  %v390_v22 = vpop.f32.mrb[6].mxu1  ;;  %v4731_v2 = vld [vmem:[#allocation8 + $0x274] ss:$28 sps:$4 sm:$0xff]   ;;  %v4728_v5 = vld [vmem:[#allocation8 + $0x96c] ss:$28 sps:$4 sm:$0xff]  }
 0x146   :  { %3428 = vmatprep.subr.bf16.mxu1 %v4671_v9  ;;  %v398_v21 = vmax.f32 %v348_v15, 0.0  ;;  %v391_v24 = vpop.f32.mrb[7].mxu1  ;;  %v4729_v8 = vld [vmem:[#allocation8 + $0x270] ss:$28 sps:$4 sm:$0xff]   ;;  %v4726_v9 = vld [vmem:[#allocation8 + $0x968] ss:$28 sps:$4 sm:$0xff]  }
 0x147   :  { %v118_v14 = vsub.s32 4, %v5457_v38  ;;  %v4732_v15 = vld [vmem:[#allocation8 + $0x9a0] ss:$28 sps:$4 sm:$0xff]  }
 0x148   :  { %3429 = vmatpush1.bf16.msra.mxu1 %v4669_v12  ;;  %v5500_v25 = vpack.c.bf16 %v398_v21, %v398_v21  ;;  %3347 = vmatpush1.bf16.msra.mxu0 %v4666_v11  ;;  %v4737_v11 = vld [vmem:[#allocation8 + $0x2ac] ss:$28 sps:$4 sm:$0xff]   ;;  %v4734_v12 = vld [vmem:[#allocation8 + $0x9a4] ss:$28 sps:$4 sm:$0xff]   ;;  %v4740_v18 = vld [vmem:[#allocation8 + $0x9dc] ss:$28 sps:$4 sm:$0xff]  }
 0x149   :  { %3430 = vmatprep.subr.bf16.mxu1 %v4677_v13  ;;  %3348 = vmatprep.subr.bf16.mxu0 %v4674_v20  ;;  %v4735_v13 = vld [vmem:[#allocation8 + $0x2a8] ss:$28 sps:$4 sm:$0xff]   ;;  %v130_v20 = vsub.s32 7, %v5457_v38  ;;  %v4741_v21 = vld [vmem:[#allocation8 + $0x2e0] ss:$28 sps:$4 sm:$0xff]   ;;  %v119_v22 = vrot.slane %v5459_v39, %v118_v14 }
 0x14a   :  { %3376 = vmatprep.mubr.bf16.mxu0 %v5500_v25  ;;  %v4743_v16 = vld [vmem:[#allocation8 + $0x2e4] ss:$28 sps:$4 sm:$0xff]   ;;  %v4749_v24 = vld [vmem:[#allocation8 + $0x31c] ss:$28 sps:$4 sm:$0xff]  }
 0x14c   :  { %3431 = vmatpush1.bf16.msra.mxu1 %v4675_v23  ;;  %3349 = vmatpush1.bf16.msra.mxu0 %v4672_v26  ;;  %v4738_v23 = vld [vmem:[#allocation8 + $0x9d8] ss:$28 sps:$4 sm:$0xff]  }
 0x14d   :  { %3432 = vmatprep.subr.bf16.mxu1 %v4683_v28  ;;  %3350 = vmatprep.subr.bf16.mxu0 %v4680_v27  ;;  %v4746_v26 = vld [vmem:[#allocation8 + $0xa14] ss:$28 sps:$4 sm:$0xff]   ;;  %v131_v27 = vrot.slane %v5459_v39, %v130_v20  ;;  %v346_v28 = vadd.f32 %v5490_v10, %v119_v22  ;;  %v4798_v20 = vld [vmem:[#allocation8 + $0xc08] ss:$28 sps:$4 sm:$0xff]  }
 0x14e   :  { %v4806_v22 = vld [vmem:[#allocation8 + $0xc44] ss:$28 sps:$4 sm:$0xff]  }
 0x150   :  { %3433 = vmatpush1.bf16.msra.mxu1 %v4681_v29  ;;  %3351 = vmatpush1.bf16.msra.mxu0 %v4678_v30  ;;  %v4747_v29 = vld [vmem:[#allocation8 + $0x318] ss:$28 sps:$4 sm:$0xff]   ;;  %v4744_v30 = vld [vmem:[#allocation8 + $0xa10] ss:$28 sps:$4 sm:$0xff]  }
 0x151   :  { %3434 = vmatprep.subr.bf16.mxu1 %v4689_v32  ;;  %3352 = vmatprep.subr.bf16.mxu0 %v4686_v31  ;;  %v4755_v31 = vld [vmem:[#allocation8 + $0x354] ss:$28 sps:$4 sm:$0xff]   ;;  %v4752_v32 = vld [vmem:[#allocation8 + $0xa4c] ss:$28 sps:$4 sm:$0xff]  }
 0x154   :  { %3435 = vmatpush1.bf16.msra.mxu1 %v4687_v33  ;;  %3353 = vmatpush1.bf16.msra.mxu0 %v4684_v34  ;;  %v389_v33 = vadd.f32 %v5498_v19, %v131_v27  ;;  %v397_v34 = vmax.f32 %v346_v28, 0.0  ;;  %v4767_v19 = vld [vmem:[#allocation8 + $0x3c4] ss:$28 sps:$4 sm:$0xff]   ;;  %v4812_v27 = vld [vmem:[#allocation8 + $0xc7c] ss:$28 sps:$4 sm:$0xff]  }
 0x155   :  { %3436 = vmatprep.subr.bf16.mxu1 %v4695_v36  ;;  %3354 = vmatprep.subr.bf16.mxu0 %v4692_v35  ;;  %v4753_v35 = vld [vmem:[#allocation8 + $0x350] ss:$28 sps:$4 sm:$0xff]   ;;  %v4750_v36 = vld [vmem:[#allocation8 + $0xa48] ss:$28 sps:$4 sm:$0xff]   ;;  %v4813_v28 = vld [vmem:[#allocation8 + $0x580] ss:$28 sps:$4 sm:$0xff]  }
 0x156   :  { %v5511_v10 = vpack.c.bf16 %v397_v34, %v397_v34  ;;  %v4827_v34 = vld [vmem:[#allocation8 + $0x5f4] ss:$28 sps:$4 sm:$0xff]  }
 0x158   :  { %3437 = vmatpush1.bf16.msra.mxu1 %v4693_v37  ;;  %3355 = vmatpush1.bf16.msra.mxu0 %v4690_v44  ;;  %v4761_v37 = vld [vmem:[#allocation8 + $0x38c] ss:$28 sps:$4 sm:$0xff]   ;;  %v4758_v44 = vld [vmem:[#allocation8 + $0xa84] ss:$28 sps:$4 sm:$0xff]  }
 0x159   :  { %3438 = vmatprep.subr.bf16.mxu1 %v4701_v45  ;;  %3356 = vmatprep.subr.bf16.mxu0 %v4698_v46  ;;  %v400_v45 = vmax.f32 %v389_v33, 0.0  ;;  %v4759_v46 = vld [vmem:[#allocation8 + $0x388] ss:$28 sps:$4 sm:$0xff]   ;;  %v4816_v33 = vld [vmem:[#allocation8 + $0xcb0] ss:$28 sps:$4 sm:$0xff]  }
 0x15c   :  { %3439 = vmatpush1.bf16.msra.mxu1 %v4699_v47  ;;  %3357 = vmatpush1.bf16.msra.mxu0 %v4696_v48  ;;  %v4756_v47 = vld [vmem:[#allocation8 + $0xa80] ss:$28 sps:$4 sm:$0xff]  }
 0x15d   :  { %3440 = vmatprep.subr.bf16.mxu1 %v4707_v50  ;;  %3358 = vmatprep.subr.bf16.mxu0 %v4704_v51  ;;  %v4764_v48 = vld [vmem:[#allocation8 + $0xabc] ss:$28 sps:$4 sm:$0xff]   ;;  %v5514_v50 = vpack.c.bf16 %v400_v45, %v400_v45  ;;  %v4830_v45 = vld [vmem:[#allocation8 + $0xd24] ss:$28 sps:$4 sm:$0xff]  }
 0x15e   :  { %v4765_v51 = vld [vmem:[#allocation8 + $0x3c0] ss:$28 sps:$4 sm:$0xff]  }
 0x160   :  { %3441 = vmatpush1.bf16.msra.mxu1 %v4705_v52  ;;  %3359 = vmatpush1.bf16.msra.mxu0 %v4702_v53  ;;  %v4762_v52 = vld [vmem:[#allocation8 + $0xab8] ss:$28 sps:$4 sm:$0xff]  }
 0x161   :  { %3442 = vmatprep.subr.bf16.mxu1 %v4713_v54  ;;  %3360 = vmatprep.subr.bf16.mxu0 %v4710_v55  ;;  %v4773_v53 = vld [vmem:[#allocation8 + $0x3fc] ss:$28 sps:$4 sm:$0xff]   ;;  %v4770_v54 = vld [vmem:[#allocation8 + $0xaf4] ss:$28 sps:$4 sm:$0xff]  }
 0x162   :  { %v4771_v55 = vld [vmem:[#allocation8 + $0x3f8] ss:$28 sps:$4 sm:$0xff]  }
 0x164   :  { %3443 = vmatpush1.bf16.msra.mxu1 %v4711_v56  ;;  %3361 = vmatpush1.bf16.msra.mxu0 %v4708_v57  ;;  %v4768_v56 = vld [vmem:[#allocation8 + $0xaf0] ss:$28 sps:$4 sm:$0xff]  }
 0x165   :  { %3444 = vmatprep.subr.bf16.mxu1 %v4719_v58  ;;  %3362 = vmatprep.subr.bf16.mxu0 %v4716_v59  ;;  %v4779_v57 = vld [vmem:[#allocation8 + $0x434] ss:$28 sps:$4 sm:$0xff]   ;;  %v4776_v58 = vld [vmem:[#allocation8 + $0xb2c] ss:$28 sps:$4 sm:$0xff]  }
 0x166   :  { %v4777_v59 = vld [vmem:[#allocation8 + $0x430] ss:$28 sps:$4 sm:$0xff]  }
 0x168   :  { %3445 = vmatpush1.bf16.msra.mxu1 %v4717_v60  ;;  %3363 = vmatpush1.bf16.msra.mxu0 %v4714_v61  ;;  %v4774_v60 = vld [vmem:[#allocation8 + $0xb28] ss:$28 sps:$4 sm:$0xff]  }
 0x169   :  { %3446 = vmatprep.subr.bf16.mxu1 %v4725_v62  ;;  %3364 = vmatprep.subr.bf16.mxu0 %v4722_v63  ;;  %v4785_v61 = vld [vmem:[#allocation8 + $0x46c] ss:$28 sps:$4 sm:$0xff]   ;;  %v4782_v62 = vld [vmem:[#allocation8 + $0xb64] ss:$28 sps:$4 sm:$0xff]  }
 0x16a   :  { %v4783_v63 = vld [vmem:[#allocation8 + $0x468] ss:$28 sps:$4 sm:$0xff]  }
 0x16c   :  { %3447 = vmatpush1.bf16.msra.mxu1 %v4723_v0  ;;  %3365 = vmatpush1.bf16.msra.mxu0 %v4720_v1  ;;  %v4780_v0 = vld [vmem:[#allocation8 + $0xb60] ss:$28 sps:$4 sm:$0xff]  }
 0x16d   :  { %3448 = vmatprep.subr.bf16.mxu1 %v4731_v2  ;;  %3366 = vmatprep.subr.bf16.mxu0 %v4728_v5  ;;  %v4791_v1 = vld [vmem:[#allocation8 + $0x4a4] ss:$28 sps:$4 sm:$0xff]   ;;  %v4788_v2 = vld [vmem:[#allocation8 + $0xb9c] ss:$28 sps:$4 sm:$0xff]  }
 0x16e   :  { %v4789_v5 = vld [vmem:[#allocation8 + $0x4a0] ss:$28 sps:$4 sm:$0xff]  }
 0x170   :  { %3449 = vmatpush1.bf16.msra.mxu1 %v4729_v8  ;;  %3367 = vmatpush1.bf16.msra.mxu0 %v4726_v9  ;;  %v4786_v8 = vld [vmem:[#allocation8 + $0xb98] ss:$28 sps:$4 sm:$0xff]  }
 0x171   :  { %3450 = vmatprep.subr.bf16.mxu1 %v4737_v11  ;;  %3368 = vmatprep.subr.bf16.mxu0 %v4734_v12  ;;  %v4797_v9 = vld [vmem:[#allocation8 + $0x4dc] ss:$28 sps:$4 sm:$0xff]   ;;  %v4794_v11 = vld [vmem:[#allocation8 + $0xbd4] ss:$28 sps:$4 sm:$0xff]  }
 0x172   :  { %v4795_v12 = vld [vmem:[#allocation8 + $0x4d8] ss:$28 sps:$4 sm:$0xff]  }
 0x174   :  { %3451 = vmatpush1.bf16.msra.mxu1 %v4735_v13  ;;  %3369 = vmatpush1.bf16.msra.mxu0 %v4732_v15  ;;  %v4792_v13 = vld [vmem:[#allocation8 + $0xbd0] ss:$28 sps:$4 sm:$0xff]  }
 0x175   :  { %3452 = vmatprep.subr.bf16.mxu1 %v4743_v16  ;;  %3370 = vmatprep.subr.bf16.mxu0 %v4740_v18  ;;  %v4803_v15 = vld [vmem:[#allocation8 + $0x514] ss:$28 sps:$4 sm:$0xff]   ;;  %v4800_v16 = vld [vmem:[#allocation8 + $0xc0c] ss:$28 sps:$4 sm:$0xff]  }
 0x176   :  { %v4801_v18 = vld [vmem:[#allocation8 + $0x510] ss:$28 sps:$4 sm:$0xff]  }
 0x178   :  { %3453 = vmatpush1.bf16.msra.mxu1 %v4741_v21  ;;  %3371 = vmatpush1.bf16.msra.mxu0 %v4738_v23  ;;  %v4809_v21 = vld [vmem:[#allocation8 + $0x54c] ss:$28 sps:$4 sm:$0xff]  }
 0x179   :  { %3454 = vmatprep.subr.bf16.mxu1 %v4749_v24  ;;  %3372 = vmatprep.subr.bf16.mxu0 %v4746_v26  ;;  %v4807_v23 = vld [vmem:[#allocation8 + $0x548] ss:$28 sps:$4 sm:$0xff]   ;;  %v4804_v24 = vld [vmem:[#allocation8 + $0xc40] ss:$28 sps:$4 sm:$0xff]  }
 0x17a   :  { %v4815_v26 = vld [vmem:[#allocation8 + $0x584] ss:$28 sps:$4 sm:$0xff]  }
 0x17c   :  { %3455 = vmatpush1.bf16.msra.mxu1 %v4747_v29  ;;  %3373 = vmatpush1.bf16.msra.mxu0 %v4744_v30  ;;  %v4810_v29 = vld [vmem:[#allocation8 + $0xc78] ss:$28 sps:$4 sm:$0xff]  }
 0x17d   :  { %3456 = vmatprep.subr.bf16.mxu1 %v4755_v31  ;;  %3374 = vmatprep.subr.bf16.mxu0 %v4752_v32  ;;  %v4821_v30 = vld [vmem:[#allocation8 + $0x5bc] ss:$28 sps:$4 sm:$0xff]   ;;  %v4818_v31 = vld [vmem:[#allocation8 + $0xcb4] ss:$28 sps:$4 sm:$0xff]  }
 0x17e   :  { %v4819_v32 = vld [vmem:[#allocation8 + $0x5b8] ss:$28 sps:$4 sm:$0xff]  }
 0x180   :  { %3457 = vmatpush1.bf16.msra.mxu1 %v4753_v35  ;;  %3375 = vmatpush1.bf16.msra.mxu0 %v4750_v36  ;;  %v4824_v35 = vld [vmem:[#allocation8 + $0xcec] ss:$28 sps:$4 sm:$0xff]  }
 0x181   :  { %3467 = vmatprep.subr.bf16.mxu1 %v4761_v37  ;;  %3385 = vmatprep.subr.bf16.mxu0 %v4758_v44  ;;  %v4825_v36 = vld [vmem:[#allocation8 + $0x5f0] ss:$28 sps:$4 sm:$0xff]   ;;  %v4822_v37 = vld [vmem:[#allocation8 + $0xce8] ss:$28 sps:$4 sm:$0xff]  }
 0x182   :  { %v4833_v44 = vld [vmem:[#allocation8 + $0x62c] ss:$28 sps:$4 sm:$0xff]  }
 0x183   :  { %3459 = vmatmul.mubr.bf16.vlgmr.msra.gmra.mrb[12].mxu1 %v5485_v6  ;;  %3377 = vmatmul.mubr.bf16.vlgmr.msra.gmra.mrb[8].mxu0 %v5511_v10 }
 0x184   :  { %3468 = vmatpush1.bf16.msra.mxu1 %v4759_v46  ;;  %3386 = vmatpush1.bf16.msra.mxu0 %v4756_v47  ;;  %v4831_v46 = vld [vmem:[#allocation8 + $0x628] ss:$28 sps:$4 sm:$0xff]   ;;  %v126_v47 = vsub.s32 6, %v5457_v38 }
 0x185   :  { %3499 = vmatprep.mubr.bf16.mxu1 %v5487_v7  ;;  %3387 = vmatprep.subr.bf16.mxu0 %v4764_v48  ;;  %v4828_v48 = vld [vmem:[#allocation8 + $0xd20] ss:$28 sps:$4 sm:$0xff]  }
 0x186   :  { %3469 = vmatprep.subr.bf16.mxu1 %v4767_v19  ;;  %3417 = vmatprep.mubr.bf16.mxu0 %v5514_v50  ;;  %v4839_v19 = vld [vmem:[#allocation8 + $0x664] ss:$28 sps:$4 sm:$0xff]  }
 0x188   :  { %3470 = vmatpush1.bf16.msra.mxu1 %v4765_v51  ;;  %3388 = vmatpush1.bf16.msra.mxu0 %v4762_v52  ;;  %v4836_v51 = vld [vmem:[#allocation8 + $0xd5c] ss:$28 sps:$4 sm:$0xff]  }
 0x189   :  { %3471 = vmatprep.subr.bf16.mxu1 %v4773_v53  ;;  %3389 = vmatprep.subr.bf16.mxu0 %v4770_v54  ;;  %v4837_v52 = vld [vmem:[#allocation8 + $0x660] ss:$28 sps:$4 sm:$0xff]   ;;  %v127_v53 = vrot.slane %v5459_v39, %v126_v47  ;;  %v4834_v54 = vld [vmem:[#allocation8 + $0xd58] ss:$28 sps:$4 sm:$0xff]   ;;  %v4846_v39 = vld [vmem:[#allocation8 + $0xdc8] ss:$28 sps:$4 sm:$0xff]  }
 0x18c   :  { %3472 = vmatpush1.bf16.msra.mxu1 %v4771_v55  ;;  %3390 = vmatpush1.bf16.msra.mxu0 %v4768_v56  ;;  %v4845_v55 = vld [vmem:[#allocation8 + $0x69c] ss:$28 sps:$4 sm:$0xff]   ;;  %v4842_v56 = vld [vmem:[#allocation8 + $0xd94] ss:$28 sps:$4 sm:$0xff]  }
 0x18d   :  { %3473 = vmatprep.subr.bf16.mxu1 %v4779_v57  ;;  %3391 = vmatprep.subr.bf16.mxu0 %v4776_v58  ;;  %v387_v57 = vadd.f32 %v5495_v17, %v127_v53  ;;  %v4843_v58 = vld [vmem:[#allocation8 + $0x698] ss:$28 sps:$4 sm:$0xff]   ;;  %v4852_v17 = vld [vmem:[#allocation8 + $0x708] ss:$28 sps:$4 sm:$0xff]  }
 0x18e   :  { %v4908_v53 = vld [vmem:[#allocation8 + $0x904] ss:$28 sps:$4 sm:$0xff]  }
 0x190   :  { %3474 = vmatpush1.bf16.msra.mxu1 %v4777_v59  ;;  %3392 = vmatpush1.bf16.msra.mxu0 %v4774_v60  ;;  %v4840_v59 = vld [vmem:[#allocation8 + $0xd90] ss:$28 sps:$4 sm:$0xff]  }
 0x191   :  { %3475 = vmatprep.subr.bf16.mxu1 %v4785_v61  ;;  %3393 = vmatprep.subr.bf16.mxu0 %v4782_v62  ;;  %v4851_v60 = vld [vmem:[#allocation8 + $0x6d4] ss:$28 sps:$4 sm:$0xff]   ;;  %v4848_v61 = vld [vmem:[#allocation8 + $0xdcc] ss:$28 sps:$4 sm:$0xff]   ;;  %v399_v62 = vmax.f32 %v387_v57, 0.0 }
 0x192   :  { %v4914_v57 = vld [vmem:[#allocation8 + $0x93c] ss:$28 sps:$4 sm:$0xff]  }
 0x194   :  { %3476 = vmatpush1.bf16.msra.mxu1 %v4783_v63  ;;  %3394 = vmatpush1.bf16.msra.mxu0 %v4780_v0  ;;  %v4849_v63 = vld [vmem:[#allocation8 + $0x6d0] ss:$28 sps:$4 sm:$0xff]  }
 0x195   :  { %3477 = vmatprep.subr.bf16.mxu1 %v4791_v1  ;;  %3395 = vmatprep.subr.bf16.mxu0 %v4788_v2  ;;  %v4854_v0 = vld [vmem:[#allocation8 + $0x70c] ss:$28 sps:$4 sm:$0xff]   ;;  %v4857_v1 = vld [vmem:[#allocation8 + $0x14] ss:$28 sps:$4 sm:$0xff]   ;;  %v5524_v2 = vpack.c.bf16 %v399_v62, %v399_v62  ;;  %v4923_v62 = vld [vmem:[#allocation8 + $0x27c] ss:$28 sps:$4 sm:$0xff]  }
 0x198   :  { %3478 = vmatpush1.bf16.msra.mxu1 %v4789_v5  ;;  %3396 = vmatpush1.bf16.msra.mxu0 %v4786_v8  ;;  %v4855_v5 = vld [vmem:[#allocation8 + $0x10] ss:$28 sps:$4 sm:$0xff]   ;;  %v4860_v8 = vld [vmem:[#allocation8 + $0x744] ss:$28 sps:$4 sm:$0xff]  }
 0x199   :  { %3479 = vmatprep.subr.bf16.mxu1 %v4797_v9  ;;  %3397 = vmatprep.subr.bf16.mxu0 %v4794_v11  ;;  %v4863_v9 = vld [vmem:[#allocation8 + $0x4c] ss:$28 sps:$4 sm:$0xff]   ;;  %v4858_v11 = vld [vmem:[#allocation8 + $0x740] ss:$28 sps:$4 sm:$0xff]  }
 0x19c   :  { %3480 = vmatpush1.bf16.msra.mxu1 %v4795_v12  ;;  %3398 = vmatpush1.bf16.msra.mxu0 %v4792_v13  ;;  %v4861_v12 = vld [vmem:[#allocation8 + $0x48] ss:$28 sps:$4 sm:$0xff]   ;;  %v4866_v13 = vld [vmem:[#allocation8 + $0x77c] ss:$28 sps:$4 sm:$0xff]  }
 0x19d   :  { %3481 = vmatprep.subr.bf16.mxu1 %v4803_v15  ;;  %3399 = vmatprep.subr.bf16.mxu0 %v4800_v16  ;;  %v4869_v15 = vld [vmem:[#allocation8 + $0x84] ss:$28 sps:$4 sm:$0xff]   ;;  %v4864_v16 = vld [vmem:[#allocation8 + $0x778] ss:$28 sps:$4 sm:$0xff]  }
 0x1a0   :  { %3482 = vmatpush1.bf16.msra.mxu1 %v4801_v18  ;;  %3400 = vmatpush1.bf16.msra.mxu0 %v4798_v20  ;;  %v4867_v18 = vld [vmem:[#allocation8 + $0x80] ss:$28 sps:$4 sm:$0xff]   ;;  %v4872_v20 = vld [vmem:[#allocation8 + $0x7b4] ss:$28 sps:$4 sm:$0xff]  }
 0x1a1   :  { %3483 = vmatprep.subr.bf16.mxu1 %v4809_v21  ;;  %3401 = vmatprep.subr.bf16.mxu0 %v4806_v22  ;;  %v4875_v21 = vld [vmem:[#allocation8 + $0xbc] ss:$28 sps:$4 sm:$0xff]   ;;  %v4870_v22 = vld [vmem:[#allocation8 + $0x7b0] ss:$28 sps:$4 sm:$0xff]  }
 0x1a4   :  { %3484 = vmatpush1.bf16.msra.mxu1 %v4807_v23  ;;  %3402 = vmatpush1.bf16.msra.mxu0 %v4804_v24  ;;  %v4873_v23 = vld [vmem:[#allocation8 + $0xb8] ss:$28 sps:$4 sm:$0xff]   ;;  %v4878_v24 = vld [vmem:[#allocation8 + $0x7ec] ss:$28 sps:$4 sm:$0xff]  }
 0x1a5   :  { %3485 = vmatprep.subr.bf16.mxu1 %v4815_v26  ;;  %3403 = vmatprep.subr.bf16.mxu0 %v4812_v27  ;;  %v4881_v26 = vld [vmem:[#allocation8 + $0xf4] ss:$28 sps:$4 sm:$0xff]   ;;  %v4876_v27 = vld [vmem:[#allocation8 + $0x7e8] ss:$28 sps:$4 sm:$0xff]  }
 0x1a8   :  { %3486 = vmatpush1.bf16.msra.mxu1 %v4813_v28  ;;  %3404 = vmatpush1.bf16.msra.mxu0 %v4810_v29  ;;  %v4879_v28 = vld [vmem:[#allocation8 + $0xf0] ss:$28 sps:$4 sm:$0xff]   ;;  %v4884_v29 = vld [vmem:[#allocation8 + $0x824] ss:$28 sps:$4 sm:$0xff]  }
 0x1a9   :  { %3487 = vmatprep.subr.bf16.mxu1 %v4821_v30  ;;  %3405 = vmatprep.subr.bf16.mxu0 %v4818_v31  ;;  %v4887_v30 = vld [vmem:[#allocation8 + $0x12c] ss:$28 sps:$4 sm:$0xff]   ;;  %v4882_v31 = vld [vmem:[#allocation8 + $0x820] ss:$28 sps:$4 sm:$0xff]  }
 0x1ac   :  { %3488 = vmatpush1.bf16.msra.mxu1 %v4819_v32  ;;  %3406 = vmatpush1.bf16.msra.mxu0 %v4816_v33  ;;  %v4885_v32 = vld [vmem:[#allocation8 + $0x128] ss:$28 sps:$4 sm:$0xff]   ;;  %v4890_v33 = vld [vmem:[#allocation8 + $0x85c] ss:$28 sps:$4 sm:$0xff]  }
 0x1ad   :  { %3489 = vmatprep.subr.bf16.mxu1 %v4827_v34  ;;  %3407 = vmatprep.subr.bf16.mxu0 %v4824_v35  ;;  %v4893_v34 = vld [vmem:[#allocation8 + $0x164] ss:$28 sps:$4 sm:$0xff]   ;;  %v4888_v35 = vld [vmem:[#allocation8 + $0x858] ss:$28 sps:$4 sm:$0xff]  }
 0x1b0   :  { %3490 = vmatpush1.bf16.msra.mxu1 %v4825_v36  ;;  %3408 = vmatpush1.bf16.msra.mxu0 %v4822_v37  ;;  %v4891_v36 = vld [vmem:[#allocation8 + $0x160] ss:$28 sps:$4 sm:$0xff]   ;;  %v4896_v37 = vld [vmem:[#allocation8 + $0x894] ss:$28 sps:$4 sm:$0xff]  }
 0x1b1   :  { %3491 = vmatprep.subr.bf16.mxu1 %v4833_v44  ;;  %3409 = vmatprep.subr.bf16.mxu0 %v4830_v45  ;;  %v4899_v44 = vld [vmem:[#allocation8 + $0x19c] ss:$28 sps:$4 sm:$0xff]   ;;  %v4894_v45 = vld [vmem:[#allocation8 + $0x890] ss:$28 sps:$4 sm:$0xff]  }
 0x1b4   :  { %3492 = vmatpush1.bf16.msra.mxu1 %v4831_v46  ;;  %3410 = vmatpush1.bf16.msra.mxu0 %v4828_v48  ;;  %v4897_v46 = vld [vmem:[#allocation8 + $0x198] ss:$28 sps:$4 sm:$0xff]   ;;  %v4902_v48 = vld [vmem:[#allocation8 + $0x8cc] ss:$28 sps:$4 sm:$0xff]  }
 0x1b5   :  { %3493 = vmatprep.subr.bf16.mxu1 %v4839_v19  ;;  %3411 = vmatprep.subr.bf16.mxu0 %v4836_v51  ;;  %v4905_v19 = vld [vmem:[#allocation8 + $0x1d4] ss:$28 sps:$4 sm:$0xff]   ;;  %v4900_v51 = vld [vmem:[#allocation8 + $0x8c8] ss:$28 sps:$4 sm:$0xff]  }
 0x1b8   :  { %3494 = vmatpush1.bf16.msra.mxu1 %v4837_v52  ;;  %3412 = vmatpush1.bf16.msra.mxu0 %v4834_v54  ;;  %v4903_v52 = vld [vmem:[#allocation8 + $0x1d0] ss:$28 sps:$4 sm:$0xff]  }
 0x1b9   :  { %3495 = vmatprep.subr.bf16.mxu1 %v4845_v55  ;;  %3413 = vmatprep.subr.bf16.mxu0 %v4842_v56  ;;  %v4911_v54 = vld [vmem:[#allocation8 + $0x20c] ss:$28 sps:$4 sm:$0xff]   ;;  %v4906_v55 = vld [vmem:[#allocation8 + $0x900] ss:$28 sps:$4 sm:$0xff]  }
 0x1ba   :  { %v4909_v56 = vld [vmem:[#allocation8 + $0x208] ss:$28 sps:$4 sm:$0xff]  }
 0x1bc   :  { %3496 = vmatpush1.bf16.msra.mxu1 %v4843_v58  ;;  %3414 = vmatpush1.bf16.msra.mxu0 %v4840_v59  ;;  %v4917_v58 = vld [vmem:[#allocation8 + $0x244] ss:$28 sps:$4 sm:$0xff]   ;;  %v4912_v59 = vld [vmem:[#allocation8 + $0x938] ss:$28 sps:$4 sm:$0xff]  }
 0x1bd   :  { %3497 = vmatprep.subr.bf16.mxu1 %v4851_v60  ;;  %3415 = vmatprep.subr.bf16.mxu0 %v4848_v61  ;;  %v4915_v60 = vld [vmem:[#allocation8 + $0x240] ss:$28 sps:$4 sm:$0xff]   ;;  %v4920_v61 = vld [vmem:[#allocation8 + $0x974] ss:$28 sps:$4 sm:$0xff]  }
 0x1c0   :  { %3498 = vmatpush1.bf16.msra.mxu1 %v4849_v63  ;;  %3416 = vmatpush1.bf16.msra.mxu0 %v4846_v39  ;;  %v4918_v63 = vld [vmem:[#allocation8 + $0x970] ss:$28 sps:$4 sm:$0xff]   ;;  %v4921_v39 = vld [vmem:[#allocation8 + $0x278] ss:$28 sps:$4 sm:$0xff]  }
 0x1c1   :  { %3508 = vmatprep.subr.bf16.mxu1 %v4854_v0  ;;  %3590 = vmatprep.subr.bf16.mxu0 %v4857_v1  ;;  %v4926_v0 = vld [vmem:[#allocation8 + $0x9ac] ss:$28 sps:$4 sm:$0xff]   ;;  %v4929_v1 = vld [vmem:[#allocation8 + $0x2b4] ss:$28 sps:$4 sm:$0xff]  }
 0x1c3   :  { %3500 = vmatmul.mubr.bf16.vlgmr.msra.gmra.mrb[12].mxu1 %v5478_v3  ;;  %3418 = vmatmul.mubr.bf16.vlgmr.msra.gmra.mrb[8].mxu0 %v5524_v2 }
 0x1c4   :  { %3509 = vmatpush1.bf16.msra.mxu1 %v4852_v17  ;;  %3540 = vmatprep.mubr.bf16.mxu1 %v5500_v25  ;;  %v4924_v17 = vld [vmem:[#allocation8 + $0x9a8] ss:$28 sps:$4 sm:$0xff]  }
 0x1c5   :  { %3591 = vmatpush1.bf16.msra.mxu0 %v4855_v5  ;;  %3622 = vmatprep.mubr.bf16.mxu0 %v5480_v4  ;;  %v4927_v5 = vld [vmem:[#allocation8 + $0x2b0] ss:$28 sps:$4 sm:$0xff]  }
 0x1c6   :  { %3510 = vmatprep.subr.bf16.mxu1 %v4860_v8  ;;  %3592 = vmatprep.subr.bf16.mxu0 %v4863_v9  ;;  %v4932_v8 = vld [vmem:[#allocation8 + $0x9e4] ss:$28 sps:$4 sm:$0xff]   ;;  %v4935_v9 = vld [vmem:[#allocation8 + $0x2ec] ss:$28 sps:$4 sm:$0xff]  }
 0x1c8   :  { %3511 = vmatpush1.bf16.msra.mxu1 %v4858_v11  ;;  %v4930_v11 = vld [vmem:[#allocation8 + $0x9e0] ss:$28 sps:$4 sm:$0xff]  }
 0x1c9   :  { %3593 = vmatpush1.bf16.msra.mxu0 %v4861_v12  ;;  %3512 = vmatprep.subr.bf16.mxu1 %v4866_v13  ;;  %v4933_v12 = vld [vmem:[#allocation8 + $0x2e8] ss:$28 sps:$4 sm:$0xff]   ;;  %v4938_v13 = vld [vmem:[#allocation8 + $0xa1c] ss:$28 sps:$4 sm:$0xff]  }
 0x1ca   :  { %3594 = vmatprep.subr.bf16.mxu0 %v4869_v15  ;;  %v4941_v15 = vld [vmem:[#allocation8 + $0x324] ss:$28 sps:$4 sm:$0xff]  }
 0x1cc   :  { %3513 = vmatpush1.bf16.msra.mxu1 %v4864_v16  ;;  %v4936_v16 = vld [vmem:[#allocation8 + $0xa18] ss:$28 sps:$4 sm:$0xff]  }
 0x1cd   :  { %3595 = vmatpush1.bf16.msra.mxu0 %v4867_v18  ;;  %3514 = vmatprep.subr.bf16.mxu1 %v4872_v20  ;;  %v4939_v18 = vld [vmem:[#allocation8 + $0x320] ss:$28 sps:$4 sm:$0xff]   ;;  %v4944_v20 = vld [vmem:[#allocation8 + $0xa54] ss:$28 sps:$4 sm:$0xff]  }
 0x1ce   :  { %3596 = vmatprep.subr.bf16.mxu0 %v4875_v21  ;;  %v4947_v21 = vld [vmem:[#allocation8 + $0x35c] ss:$28 sps:$4 sm:$0xff]  }
 0x1d0   :  { %3515 = vmatpush1.bf16.msra.mxu1 %v4870_v22  ;;  %v4942_v22 = vld [vmem:[#allocation8 + $0xa50] ss:$28 sps:$4 sm:$0xff]  }
 0x1d1   :  { %3597 = vmatpush1.bf16.msra.mxu0 %v4873_v23  ;;  %3516 = vmatprep.subr.bf16.mxu1 %v4878_v24  ;;  %v4945_v23 = vld [vmem:[#allocation8 + $0x358] ss:$28 sps:$4 sm:$0xff]   ;;  %v4950_v24 = vld [vmem:[#allocation8 + $0xa8c] ss:$28 sps:$4 sm:$0xff]  }
 0x1d2   :  { %3598 = vmatprep.subr.bf16.mxu0 %v4881_v26  ;;  %v4953_v26 = vld [vmem:[#allocation8 + $0x394] ss:$28 sps:$4 sm:$0xff]  }
 0x1d4   :  { %3517 = vmatpush1.bf16.msra.mxu1 %v4876_v27  ;;  %v4948_v27 = vld [vmem:[#allocation8 + $0xa88] ss:$28 sps:$4 sm:$0xff]  }
 0x1d5   :  { %3599 = vmatpush1.bf16.msra.mxu0 %v4879_v28  ;;  %3518 = vmatprep.subr.bf16.mxu1 %v4884_v29  ;;  %v4951_v28 = vld [vmem:[#allocation8 + $0x390] ss:$28 sps:$4 sm:$0xff]   ;;  %v4956_v29 = vld [vmem:[#allocation8 + $0xac4] ss:$28 sps:$4 sm:$0xff]  }
 0x1d6   :  { %3600 = vmatprep.subr.bf16.mxu0 %v4887_v30  ;;  %v4959_v30 = vld [vmem:[#allocation8 + $0x3cc] ss:$28 sps:$4 sm:$0xff]  }
 0x1d8   :  { %3519 = vmatpush1.bf16.msra.mxu1 %v4882_v31  ;;  %v4954_v31 = vld [vmem:[#allocation8 + $0xac0] ss:$28 sps:$4 sm:$0xff]  }
 0x1d9   :  { %3601 = vmatpush1.bf16.msra.mxu0 %v4885_v32  ;;  %3520 = vmatprep.subr.bf16.mxu1 %v4890_v33  ;;  %v4957_v32 = vld [vmem:[#allocation8 + $0x3c8] ss:$28 sps:$4 sm:$0xff]   ;;  %v4962_v33 = vld [vmem:[#allocation8 + $0xafc] ss:$28 sps:$4 sm:$0xff]  }
 0x1da   :  { %3602 = vmatprep.subr.bf16.mxu0 %v4893_v34  ;;  %v4965_v34 = vld [vmem:[#allocation8 + $0x404] ss:$28 sps:$4 sm:$0xff]  }
 0x1dc   :  { %3521 = vmatpush1.bf16.msra.mxu1 %v4888_v35  ;;  %v4960_v35 = vld [vmem:[#allocation8 + $0xaf8] ss:$28 sps:$4 sm:$0xff]  }
 0x1dd   :  { %3603 = vmatpush1.bf16.msra.mxu0 %v4891_v36  ;;  %3522 = vmatprep.subr.bf16.mxu1 %v4896_v37  ;;  %v4963_v36 = vld [vmem:[#allocation8 + $0x400] ss:$28 sps:$4 sm:$0xff]   ;;  %v4968_v37 = vld [vmem:[#allocation8 + $0xb34] ss:$28 sps:$4 sm:$0xff]  }
 0x1de   :  { %3604 = vmatprep.subr.bf16.mxu0 %v4899_v44  ;;  %v4971_v44 = vld [vmem:[#allocation8 + $0x43c] ss:$28 sps:$4 sm:$0xff]  }
 0x1e0   :  { %3523 = vmatpush1.bf16.msra.mxu1 %v4894_v45  ;;  %v4966_v45 = vld [vmem:[#allocation8 + $0xb30] ss:$28 sps:$4 sm:$0xff]  }
 0x1e1   :  { %3605 = vmatpush1.bf16.msra.mxu0 %v4897_v46  ;;  %3524 = vmatprep.subr.bf16.mxu1 %v4902_v48  ;;  %v4969_v46 = vld [vmem:[#allocation8 + $0x438] ss:$28 sps:$4 sm:$0xff]   ;;  %v4974_v48 = vld [vmem:[#allocation8 + $0xb6c] ss:$28 sps:$4 sm:$0xff]  }
 0x1e2   :  { %3606 = vmatprep.subr.bf16.mxu0 %v4905_v19  ;;  %v4977_v19 = vld [vmem:[#allocation8 + $0x474] ss:$28 sps:$4 sm:$0xff]  }
 0x1e4   :  { %3525 = vmatpush1.bf16.msra.mxu1 %v4900_v51  ;;  %v4972_v51 = vld [vmem:[#allocation8 + $0xb68] ss:$28 sps:$4 sm:$0xff]  }
 0x1e5   :  { %3607 = vmatpush1.bf16.msra.mxu0 %v4903_v52  ;;  %3526 = vmatprep.subr.bf16.mxu1 %v4908_v53  ;;  %v4975_v52 = vld [vmem:[#allocation8 + $0x470] ss:$28 sps:$4 sm:$0xff]   ;;  %v4980_v53 = vld [vmem:[#allocation8 + $0xba4] ss:$28 sps:$4 sm:$0xff]  }
 0x1e6   :  { %3608 = vmatprep.subr.bf16.mxu0 %v4911_v54  ;;  %v4983_v54 = vld [vmem:[#allocation8 + $0x4ac] ss:$28 sps:$4 sm:$0xff]  }
 0x1e8   :  { %3527 = vmatpush1.bf16.msra.mxu1 %v4906_v55  ;;  %v4978_v55 = vld [vmem:[#allocation8 + $0xba0] ss:$28 sps:$4 sm:$0xff]  }
 0x1e9   :  { %3609 = vmatpush1.bf16.msra.mxu0 %v4909_v56  ;;  %3528 = vmatprep.subr.bf16.mxu1 %v4914_v57  ;;  %v4981_v56 = vld [vmem:[#allocation8 + $0x4a8] ss:$28 sps:$4 sm:$0xff]   ;;  %v4986_v57 = vld [vmem:[#allocation8 + $0xbdc] ss:$28 sps:$4 sm:$0xff]  }
 0x1ea   :  { %3610 = vmatprep.subr.bf16.mxu0 %v4917_v58 }
 0x1ec   :  { %3529 = vmatpush1.bf16.msra.mxu1 %v4912_v59  ;;  %v4989_v59 = vld [vmem:[#allocation8 + $0x4e4] ss:$28 sps:$4 sm:$0xff]  }
 0x1ed   :  { %3611 = vmatpush1.bf16.msra.mxu0 %v4915_v60  ;;  %3530 = vmatprep.subr.bf16.mxu1 %v4920_v61 }
 0x1ee   :  { %3612 = vmatprep.subr.bf16.mxu0 %v4923_v62  ;;  %v4984_v62 = vld [vmem:[#allocation8 + $0xbd8] ss:$28 sps:$4 sm:$0xff]  }
 0x1f0   :  { %3531 = vmatpush1.bf16.msra.mxu1 %v4918_v63 }
 0x1f1   :  { %3613 = vmatpush1.bf16.msra.mxu0 %v4921_v39  ;;  %3532 = vmatprep.subr.bf16.mxu1 %v4926_v0  ;;  %v4987_v39 = vld [vmem:[#allocation8 + $0x4e0] ss:$28 sps:$4 sm:$0xff]   ;;  %v4992_v0 = vld [vmem:[#allocation8 + $0xc14] ss:$28 sps:$4 sm:$0xff]  }
 0x1f2   :  { %3614 = vmatprep.subr.bf16.mxu0 %v4929_v1  ;;  %v4995_v1 = vld [vmem:[#allocation8 + $0x51c] ss:$28 sps:$4 sm:$0xff]  }
 0x1f4   :  { %3533 = vmatpush1.bf16.msra.mxu1 %v4924_v17  ;;  %v4990_v17 = vld [vmem:[#allocation8 + $0xc10] ss:$28 sps:$4 sm:$0xff]  }
 0x1f5   :  { %3615 = vmatpush1.bf16.msra.mxu0 %v4927_v5  ;;  %3534 = vmatprep.subr.bf16.mxu1 %v4932_v8  ;;  %v4993_v5 = vld [vmem:[#allocation8 + $0x518] ss:$28 sps:$4 sm:$0xff]   ;;  %v4998_v8 = vld [vmem:[#allocation8 + $0xc4c] ss:$28 sps:$4 sm:$0xff]  }
 0x1f6   :  { %3616 = vmatprep.subr.bf16.mxu0 %v4935_v9  ;;  %v5001_v9 = vld [vmem:[#allocation8 + $0x554] ss:$28 sps:$4 sm:$0xff]  }
 0x1f8   :  { %3535 = vmatpush1.bf16.msra.mxu1 %v4930_v11  ;;  %v4996_v11 = vld [vmem:[#allocation8 + $0xc48] ss:$28 sps:$4 sm:$0xff]  }
 0x1f9   :  { %3617 = vmatpush1.bf16.msra.mxu0 %v4933_v12  ;;  %3536 = vmatprep.subr.bf16.mxu1 %v4938_v13  ;;  %v4999_v12 = vld [vmem:[#allocation8 + $0x550] ss:$28 sps:$4 sm:$0xff]   ;;  %v5004_v13 = vld [vmem:[#allocation8 + $0xc84] ss:$28 sps:$4 sm:$0xff]  }
 0x1fa   :  { %3618 = vmatprep.subr.bf16.mxu0 %v4941_v15  ;;  %v5007_v15 = vld [vmem:[#allocation8 + $0x58c] ss:$28 sps:$4 sm:$0xff]  }
 0x1fc   :  { %3537 = vmatpush1.bf16.msra.mxu1 %v4936_v16  ;;  %v5002_v16 = vld [vmem:[#allocation8 + $0xc80] ss:$28 sps:$4 sm:$0xff]  }
 0x1fd   :  { %3619 = vmatpush1.bf16.msra.mxu0 %v4939_v18  ;;  %3538 = vmatprep.subr.bf16.mxu1 %v4944_v20  ;;  %v5005_v18 = vld [vmem:[#allocation8 + $0x588] ss:$28 sps:$4 sm:$0xff]   ;;  %v5010_v20 = vld [vmem:[#allocation8 + $0xcbc] ss:$28 sps:$4 sm:$0xff]  }
 0x1fe   :  { %3620 = vmatprep.subr.bf16.mxu0 %v4947_v21  ;;  %v5013_v21 = vld [vmem:[#allocation8 + $0x5c4] ss:$28 sps:$4 sm:$0xff]  }
 0x200   :  { %3539 = vmatpush1.bf16.msra.mxu1 %v4942_v22  ;;  %v5008_v22 = vld [vmem:[#allocation8 + $0xcb8] ss:$28 sps:$4 sm:$0xff]  }
 0x201   :  { %3621 = vmatpush1.bf16.msra.mxu0 %v4945_v23  ;;  %3549 = vmatprep.subr.bf16.mxu1 %v4950_v24  ;;  %v5011_v23 = vld [vmem:[#allocation8 + $0x5c0] ss:$28 sps:$4 sm:$0xff]   ;;  %v5016_v24 = vld [vmem:[#allocation8 + $0xcf4] ss:$28 sps:$4 sm:$0xff]  }
 0x202   :  { %3631 = vmatprep.subr.bf16.mxu0 %v4953_v26  ;;  %v5019_v26 = vld [vmem:[#allocation8 + $0x5fc] ss:$28 sps:$4 sm:$0xff]  }
 0x203   :  { %3541 = vmatmul.mubr.bf16.vlgmr.msra.gmra.mrb[12].mxu1 %v5511_v10 }
 0x204   :  { %3623 = vmatmul.mubr.bf16.vlgmr.msra.gmra.mrb[12].mxu0 %v5485_v6  ;;  %3550 = vmatpush1.bf16.msra.mxu1 %v4948_v27  ;;  %v5014_v27 = vld [vmem:[#allocation8 + $0xcf0] ss:$28 sps:$4 sm:$0xff]  }
 0x205   :  { %3581 = vmatprep.mubr.bf16.mxu1 %v5514_v50  ;;  %3632 = vmatpush1.bf16.msra.mxu0 %v4951_v28  ;;  %v5017_v28 = vld [vmem:[#allocation8 + $0x5f8] ss:$28 sps:$4 sm:$0xff]  }
 0x206   :  { %3663 = vmatprep.mubr.bf16.mxu0 %v5487_v7  ;;  %3551 = vmatprep.subr.bf16.mxu1 %v4956_v29  ;;  %v5022_v29 = vld [vmem:[#allocation8 + $0xd2c] ss:$28 sps:$4 sm:$0xff]  }
 0x207   :  { %3633 = vmatprep.subr.bf16.mxu0 %v4959_v30  ;;  %v5025_v30 = vld [vmem:[#allocation8 + $0x634] ss:$28 sps:$4 sm:$0xff]  }
 0x208   :  { %3552 = vmatpush1.bf16.msra.mxu1 %v4954_v31  ;;  %v5020_v31 = vld [vmem:[#allocation8 + $0xd28] ss:$28 sps:$4 sm:$0xff]  }
 0x209   :  { %3634 = vmatpush1.bf16.msra.mxu0 %v4957_v32  ;;  %3553 = vmatprep.subr.bf16.mxu1 %v4962_v33  ;;  %v5023_v32 = vld [vmem:[#allocation8 + $0x630] ss:$28 sps:$4 sm:$0xff]   ;;  %v5028_v33 = vld [vmem:[#allocation8 + $0xd64] ss:$28 sps:$4 sm:$0xff]  }
 0x20a   :  { %3635 = vmatprep.subr.bf16.mxu0 %v4965_v34  ;;  %v5031_v34 = vld [vmem:[#allocation8 + $0x66c] ss:$28 sps:$4 sm:$0xff]  }
 0x20c   :  { %3554 = vmatpush1.bf16.msra.mxu1 %v4960_v35  ;;  %v5026_v35 = vld [vmem:[#allocation8 + $0xd60] ss:$28 sps:$4 sm:$0xff]  }
 0x20d   :  { %3636 = vmatpush1.bf16.msra.mxu0 %v4963_v36  ;;  %3555 = vmatprep.subr.bf16.mxu1 %v4968_v37  ;;  %v5029_v36 = vld [vmem:[#allocation8 + $0x668] ss:$28 sps:$4 sm:$0xff]   ;;  %v5034_v37 = vld [vmem:[#allocation8 + $0xd9c] ss:$28 sps:$4 sm:$0xff]  }
 0x20e   :  { %3637 = vmatprep.subr.bf16.mxu0 %v4971_v44  ;;  %v5037_v44 = vld [vmem:[#allocation8 + $0x6a4] ss:$28 sps:$4 sm:$0xff]  }
 0x210   :  { %3556 = vmatpush1.bf16.msra.mxu1 %v4966_v45  ;;  %v5032_v45 = vld [vmem:[#allocation8 + $0xd98] ss:$28 sps:$4 sm:$0xff]  }
 0x211   :  { %3638 = vmatpush1.bf16.msra.mxu0 %v4969_v46  ;;  %3557 = vmatprep.subr.bf16.mxu1 %v4974_v48  ;;  %v5035_v46 = vld [vmem:[#allocation8 + $0x6a0] ss:$28 sps:$4 sm:$0xff]   ;;  %v5040_v48 = vld [vmem:[#allocation8 + $0xdd4] ss:$28 sps:$4 sm:$0xff]  }
 0x212   :  { %3639 = vmatprep.subr.bf16.mxu0 %v4977_v19  ;;  %v5043_v19 = vld [vmem:[#allocation8 + $0x6dc] ss:$28 sps:$4 sm:$0xff]  }
 0x214   :  { %3558 = vmatpush1.bf16.msra.mxu1 %v4972_v51  ;;  %v5038_v51 = vld [vmem:[#allocation8 + $0xdd0] ss:$28 sps:$4 sm:$0xff]  }
 0x215   :  { %3640 = vmatpush1.bf16.msra.mxu0 %v4975_v52  ;;  %3559 = vmatprep.subr.bf16.mxu1 %v4980_v53  ;;  %v5041_v52 = vld [vmem:[#allocation8 + $0x6d8] ss:$28 sps:$4 sm:$0xff]  }
 0x216   :  { %v5534_v58 = vpop.f32.mrb[8].mxu1  ;;  %3641 = vmatprep.subr.bf16.mxu0 %v4983_v54  ;;  %v5047_v53 = vld [vmem:[#allocation8 + $0x1d8] ss:$28 sps:$4 sm:$0xff]  }
 0x217   :  { %v5536_v60 = vpop.f32.mrb[9].mxu1  ;;  %v5046_v54 = vld [vmem:[#allocation8 + $0x714] ss:$28 sps:$4 sm:$0xff]  }
 0x218   :  { %3560 = vmatpush1.bf16.msra.mxu1 %v4978_v55  ;;  %v3300_v61 = vpop.f32.mrb[10].mxu1  ;;  %v5048_v55 = vld [vmem:[#allocation8 + $0x18] ss:$28 sps:$4 sm:$0xff]  }
 0x219   :  { %3642 = vmatpush1.bf16.msra.mxu0 %v4981_v56  ;;  %v3301_v63 = vpop.f32.mrb[11].mxu1  ;;  %3561 = vmatprep.subr.bf16.mxu1 %v4986_v57  ;;  %v5044_v56 = vld [vmem:[#allocation8 + $0x710] ss:$28 sps:$4 sm:$0xff]  }
 0x21a   :  { %3643 = vmatprep.subr.bf16.mxu0 %v4989_v59  ;;  %v5051_v57 = vld [vmem:[#allocation8 + $0x74c] ss:$28 sps:$4 sm:$0xff]  }
 0x21b   :  { %v5052_v59 = vld [vmem:[#allocation8 + $0x210] ss:$28 sps:$4 sm:$0xff]   ;;  %v5057_v63 = vld [vmem:[#allocation8 + $0x248] ss:$28 sps:$4 sm:$0xff]  }
 0x21c   :  { %3562 = vmatpush1.bf16.msra.mxu1 %v4984_v62  ;;  %v5053_v61 = vld [vmem:[#allocation8 + $0x50] ss:$28 sps:$4 sm:$0xff]   ;;  %v5049_v62 = vld [vmem:[#allocation8 + $0x748] ss:$28 sps:$4 sm:$0xff]  }
 0x21d   :  { %3644 = vmatpush1.bf16.msra.mxu0 %v4987_v39  ;;  %3563 = vmatprep.subr.bf16.mxu1 %v4992_v0  ;;  %v5056_v39 = vld [vmem:[#allocation8 + $0x784] ss:$28 sps:$4 sm:$0xff]  }
 0x21e   :  { %3645 = vmatprep.subr.bf16.mxu0 %v4995_v1  ;;  %v5058_v0 = vld [vmem:[#allocation8 + $0x88] ss:$28 sps:$4 sm:$0xff]   ;;  %v5054_v1 = vld [vmem:[#allocation8 + $0x780] ss:$28 sps:$4 sm:$0xff]  }
 0x220   :  { %3564 = vmatpush1.bf16.msra.mxu1 %v4990_v17  ;;  %v5062_v17 = vld [vmem:[#allocation8 + $0x280] ss:$28 sps:$4 sm:$0xff]  }
 0x221   :  { %3646 = vmatpush1.bf16.msra.mxu0 %v4993_v5  ;;  %3565 = vmatprep.subr.bf16.mxu1 %v4998_v8  ;;  %v5061_v5 = vld [vmem:[#allocation8 + $0x7bc] ss:$28 sps:$4 sm:$0xff]  }
 0x222   :  { %3647 = vmatprep.subr.bf16.mxu0 %v5001_v9  ;;  %v5063_v8 = vld [vmem:[#allocation8 + $0xc0] ss:$28 sps:$4 sm:$0xff]   ;;  %v5059_v9 = vld [vmem:[#allocation8 + $0x7b8] ss:$28 sps:$4 sm:$0xff]  }
 0x224   :  { %3566 = vmatpush1.bf16.msra.mxu1 %v4996_v11  ;;  %v5067_v11 = vld [vmem:[#allocation8 + $0x2b8] ss:$28 sps:$4 sm:$0xff]  }
 0x225   :  { %3648 = vmatpush1.bf16.msra.mxu0 %v4999_v12  ;;  %3567 = vmatprep.subr.bf16.mxu1 %v5004_v13  ;;  %v5066_v12 = vld [vmem:[#allocation8 + $0x7f4] ss:$28 sps:$4 sm:$0xff]  }
 0x226   :  { %3649 = vmatprep.subr.bf16.mxu0 %v5007_v15  ;;  %v5064_v13 = vld [vmem:[#allocation8 + $0x7f0] ss:$28 sps:$4 sm:$0xff]  }
 0x227   :  { %v5072_v15 = vld [vmem:[#allocation8 + $0x2f0] ss:$28 sps:$4 sm:$0xff]  }
 0x228   :  { %3568 = vmatpush1.bf16.msra.mxu1 %v5002_v16  ;;  %v5071_v16 = vld [vmem:[#allocation8 + $0x82c] ss:$28 sps:$4 sm:$0xff]  }
 0x229   :  { %3650 = vmatpush1.bf16.msra.mxu0 %v5005_v18  ;;  %3569 = vmatprep.subr.bf16.mxu1 %v5010_v20  ;;  %v5073_v18 = vld [vmem:[#allocation8 + $0x130] ss:$28 sps:$4 sm:$0xff]   ;;  %v5069_v20 = vld [vmem:[#allocation8 + $0x828] ss:$28 sps:$4 sm:$0xff]  }
 0x22a   :  { %3651 = vmatprep.subr.bf16.mxu0 %v5013_v21  ;;  %v5077_v21 = vld [vmem:[#allocation8 + $0x328] ss:$28 sps:$4 sm:$0xff]  }
 0x22c   :  { %3570 = vmatpush1.bf16.msra.mxu1 %v5008_v22  ;;  %v5076_v22 = vld [vmem:[#allocation8 + $0x864] ss:$28 sps:$4 sm:$0xff]  }
 0x22d   :  { %3652 = vmatpush1.bf16.msra.mxu0 %v5011_v23  ;;  %3571 = vmatprep.subr.bf16.mxu1 %v5016_v24  ;;  %v5078_v23 = vld [vmem:[#allocation8 + $0x168] ss:$28 sps:$4 sm:$0xff]   ;;  %v5074_v24 = vld [vmem:[#allocation8 + $0x860] ss:$28 sps:$4 sm:$0xff]  }
 0x22e   :  { %3653 = vmatprep.subr.bf16.mxu0 %v5019_v26  ;;  %v5082_v26 = vld [vmem:[#allocation8 + $0x360] ss:$28 sps:$4 sm:$0xff]  }
 0x230   :  { %3572 = vmatpush1.bf16.msra.mxu1 %v5014_v27  ;;  %v5081_v27 = vld [vmem:[#allocation8 + $0x89c] ss:$28 sps:$4 sm:$0xff]  }
 0x231   :  { %3654 = vmatpush1.bf16.msra.mxu0 %v5017_v28  ;;  %3573 = vmatprep.subr.bf16.mxu1 %v5022_v29  ;;  %v5083_v28 = vld [vmem:[#allocation8 + $0x1a0] ss:$28 sps:$4 sm:$0xff]   ;;  %v5079_v29 = vld [vmem:[#allocation8 + $0x898] ss:$28 sps:$4 sm:$0xff]  }
 0x232   :  { %3655 = vmatprep.subr.bf16.mxu0 %v5025_v30  ;;  %v5087_v30 = vld [vmem:[#allocation8 + $0x558] ss:$28 sps:$4 sm:$0xff]  }
 0x234   :  { %3574 = vmatpush1.bf16.msra.mxu1 %v5020_v31  ;;  %v5086_v31 = vld [vmem:[#allocation8 + $0x8d4] ss:$28 sps:$4 sm:$0xff]  }
 0x235   :  { %3656 = vmatpush1.bf16.msra.mxu0 %v5023_v32  ;;  %3575 = vmatprep.subr.bf16.mxu1 %v5028_v33  ;;  %v5088_v32 = vld [vmem:[#allocation8 + $0x398] ss:$28 sps:$4 sm:$0xff]   ;;  %v5084_v33 = vld [vmem:[#allocation8 + $0x8d0] ss:$28 sps:$4 sm:$0xff]  }
 0x236   :  { %3657 = vmatprep.subr.bf16.mxu0 %v5031_v34  ;;  %v5092_v34 = vld [vmem:[#allocation8 + $0x590] ss:$28 sps:$4 sm:$0xff]  }
 0x238   :  { %3576 = vmatpush1.bf16.msra.mxu1 %v5026_v35  ;;  %v5091_v35 = vld [vmem:[#allocation8 + $0x90c] ss:$28 sps:$4 sm:$0xff]  }
 0x239   :  { %3658 = vmatpush1.bf16.msra.mxu0 %v5029_v36  ;;  %3577 = vmatprep.subr.bf16.mxu1 %v5034_v37  ;;  %v5093_v36 = vld [vmem:[#allocation8 + $0x3d0] ss:$28 sps:$4 sm:$0xff]   ;;  %v5089_v37 = vld [vmem:[#allocation8 + $0x908] ss:$28 sps:$4 sm:$0xff]  }
 0x23a   :  { %3659 = vmatprep.subr.bf16.mxu0 %v5037_v44  ;;  %v5097_v44 = vld [vmem:[#allocation8 + $0x5c8] ss:$28 sps:$4 sm:$0xff]  }
 0x23c   :  { %3578 = vmatpush1.bf16.msra.mxu1 %v5032_v45  ;;  %v5096_v45 = vld [vmem:[#allocation8 + $0x944] ss:$28 sps:$4 sm:$0xff]  }
 0x23d   :  { %3660 = vmatpush1.bf16.msra.mxu0 %v5035_v46  ;;  %3579 = vmatprep.subr.bf16.mxu1 %v5040_v48  ;;  %v5098_v46 = vld [vmem:[#allocation8 + $0x408] ss:$28 sps:$4 sm:$0xff]   ;;  %v5094_v48 = vld [vmem:[#allocation8 + $0x940] ss:$28 sps:$4 sm:$0xff]  }
 0x23e   :  { %3661 = vmatprep.subr.bf16.mxu0 %v5043_v19  ;;  %v5102_v19 = vld [vmem:[#allocation8 + $0x600] ss:$28 sps:$4 sm:$0xff]  }
 0x240   :  { %3580 = vmatpush1.bf16.msra.mxu1 %v5038_v51  ;;  %v5101_v51 = vld [vmem:[#allocation8 + $0x97c] ss:$28 sps:$4 sm:$0xff]  }
 0x241   :  { %3662 = vmatpush1.bf16.msra.mxu0 %v5041_v52  ;;  %4417 = vmatprep.subr.bf16.mxu1 %v5047_v53  ;;  %v5099_v52 = vld [vmem:[#allocation8 + $0x978] ss:$28 sps:$4 sm:$0xff]  }
 0x242   :  { %3672 = vmatprep.subr.bf16.mxu0 %v5046_v54  ;;  %v5106_v53 = vld [vmem:[#allocation8 + $0x9b4] ss:$28 sps:$4 sm:$0xff]  }
 0x243   :  { %3582 = vmatmul.mubr.bf16.vlgmr.msra.gmra.mrb[12].mxu1 %v5524_v2  ;;  %v5108_v54 = vld [vmem:[#allocation8 + $0x478] ss:$28 sps:$4 sm:$0xff]  }
 0x244   :  { %3664 = vmatmul.mubr.bf16.vlgmr.msra.gmra.mrb[12].mxu0 %v5478_v3  ;;  %4418 = vmatpush3.bf16.msra.mxu1 %v5048_v55  ;;  %v5104_v55 = vld [vmem:[#allocation8 + $0x9b0] ss:$28 sps:$4 sm:$0xff]  }
 0x245   :  { %3673 = vmatpush1.bf16.msra.mxu0 %v5044_v56  ;;  %3704 = vmatprep.mubr.bf16.mxu0 %v5500_v25  ;;  %v5112_v56 = vld [vmem:[#allocation8 + $0x670] ss:$28 sps:$4 sm:$0xff]  }
 0x246   :  { %3786 = vmatprep.mubr.bf16.mxu1 %v5480_v4  ;;  %3674 = vmatprep.subr.bf16.mxu0 %v5051_v57  ;;  %v5068_v4 = vld [vmem:[#allocation8 + $0xf8] ss:$28 sps:$4 sm:$0xff]   ;;  %v5111_v57 = vld [vmem:[#allocation8 + $0x9ec] ss:$28 sps:$4 sm:$0xff]  }
 0x247   :  { %4419 = vmatprep.subr.bf16.mxu1 %v5052_v59  ;;  %v5113_v59 = vld [vmem:[#allocation8 + $0x4b0] ss:$28 sps:$4 sm:$0xff]  }
 0x248   :  { %4420 = vmatpush3.bf16.msra.mxu1 %v5053_v61  ;;  %v5109_v61 = vld [vmem:[#allocation8 + $0x9e8] ss:$28 sps:$4 sm:$0xff]  }
 0x249   :  { %3675 = vmatpush1.bf16.msra.mxu0 %v5049_v62  ;;  %4421 = vmatprep.subr.bf16.mxu1 %v5057_v63  ;;  %v5117_v62 = vld [vmem:[#allocation8 + $0x6a8] ss:$28 sps:$4 sm:$0xff]  }
 0x24a   :  { %3676 = vmatprep.subr.bf16.mxu0 %v5056_v39  ;;  %v5116_v63 = vld [vmem:[#allocation8 + $0xa24] ss:$28 sps:$4 sm:$0xff]  }
 0x24b   :  { %v5118_v39 = vld [vmem:[#allocation8 + $0x4e8] ss:$28 sps:$4 sm:$0xff]  }
 0x24c   :  { %4422 = vmatpush3.bf16.msra.mxu1 %v5058_v0  ;;  %v5114_v0 = vld [vmem:[#allocation8 + $0xa20] ss:$28 sps:$4 sm:$0xff]  }
 0x24d   :  { %3677 = vmatpush1.bf16.msra.mxu0 %v5054_v1  ;;  %4423 = vmatprep.subr.bf16.mxu1 %v5062_v17  ;;  %v5122_v1 = vld [vmem:[#allocation8 + $0x6e0] ss:$28 sps:$4 sm:$0xff]  }
 0x24e   :  { %3678 = vmatprep.subr.bf16.mxu0 %v5061_v5  ;;  %v5121_v17 = vld [vmem:[#allocation8 + $0xa5c] ss:$28 sps:$4 sm:$0xff]  }
 0x24f   :  { %v5123_v5 = vld [vmem:[#allocation8 + $0x520] ss:$28 sps:$4 sm:$0xff]  }
 0x250   :  { %4424 = vmatpush3.bf16.msra.mxu1 %v5063_v8  ;;  %v5119_v8 = vld [vmem:[#allocation8 + $0xa58] ss:$28 sps:$4 sm:$0xff]  }
 0x251   :  { %3679 = vmatpush1.bf16.msra.mxu0 %v5059_v9  ;;  %4425 = vmatprep.subr.bf16.mxu1 %v5067_v11  ;;  %v5127_v9 = vld [vmem:[#allocation8 + $0x8d8] ss:$28 sps:$4 sm:$0xff]  }
 0x252   :  { %3680 = vmatprep.subr.bf16.mxu0 %v5066_v12  ;;  %v5126_v11 = vld [vmem:[#allocation8 + $0xa94] ss:$28 sps:$4 sm:$0xff]  }
 0x253   :  { %v5128_v12 = vld [vmem:[#allocation8 + $0x718] ss:$28 sps:$4 sm:$0xff]  }
 0x254   :  { %4426 = vmatpush3.bf16.msra.mxu1 %v5068_v4  ;;  %v5124_v4 = vld [vmem:[#allocation8 + $0xa90] ss:$28 sps:$4 sm:$0xff]  }
 0x255   :  { %3681 = vmatpush1.bf16.msra.mxu0 %v5064_v13  ;;  %4427 = vmatprep.subr.bf16.mxu1 %v5072_v15  ;;  %v5131_v13 = vld [vmem:[#allocation8 + $0xacc] ss:$28 sps:$4 sm:$0xff]  }
 0x256   :  { %3682 = vmatprep.subr.bf16.mxu0 %v5071_v16  ;;  %v5132_v15 = vld [vmem:[#allocation8 + $0x910] ss:$28 sps:$4 sm:$0xff]  }
 0x257   :  { %v5133_v16 = vld [vmem:[#allocation8 + $0x750] ss:$28 sps:$4 sm:$0xff]  }
 0x258   :  { %4428 = vmatpush3.bf16.msra.mxu1 %v5073_v18  ;;  %v5129_v18 = vld [vmem:[#allocation8 + $0xac8] ss:$28 sps:$4 sm:$0xff]  }
 0x259   :  { %3683 = vmatpush1.bf16.msra.mxu0 %v5069_v20  ;;  %4429 = vmatprep.subr.bf16.mxu1 %v5077_v21  ;;  %v5137_v20 = vld [vmem:[#allocation8 + $0x948] ss:$28 sps:$4 sm:$0xff]  }
 0x25a   :  { %3684 = vmatprep.subr.bf16.mxu0 %v5076_v22  ;;  %v5136_v21 = vld [vmem:[#allocation8 + $0xb04] ss:$28 sps:$4 sm:$0xff]  }
 0x25b   :  { %v5138_v22 = vld [vmem:[#allocation8 + $0x788] ss:$28 sps:$4 sm:$0xff]  }
 0x25c   :  { %4430 = vmatpush3.bf16.msra.mxu1 %v5078_v23  ;;  %v5134_v23 = vld [vmem:[#allocation8 + $0xb00] ss:$28 sps:$4 sm:$0xff]  }
 0x25d   :  { %3685 = vmatpush1.bf16.msra.mxu0 %v5074_v24  ;;  %4431 = vmatprep.subr.bf16.mxu1 %v5082_v26  ;;  %v5141_v24 = vld [vmem:[#allocation8 + $0xb3c] ss:$28 sps:$4 sm:$0xff]  }
 0x25e   :  { %3686 = vmatprep.subr.bf16.mxu0 %v5081_v27  ;;  %v5143_v26 = vld [vmem:[#allocation8 + $0x7c0] ss:$28 sps:$4 sm:$0xff]   ;;  %v5139_v27 = vld [vmem:[#allocation8 + $0xb38] ss:$28 sps:$4 sm:$0xff]  }
 0x260   :  { %4432 = vmatpush3.bf16.msra.mxu1 %v5083_v28  ;;  %v5147_v28 = vld [vmem:[#allocation8 + $0x9b8] ss:$28 sps:$4 sm:$0xff]  }
 0x261   :  { %3687 = vmatpush1.bf16.msra.mxu0 %v5079_v29  ;;  %4439 = vmatprep.subr.bf16.mxu1 %v5087_v30  ;;  %v5146_v29 = vld [vmem:[#allocation8 + $0xb74] ss:$28 sps:$4 sm:$0xff]  }
 0x262   :  { %3688 = vmatprep.subr.bf16.mxu0 %v5086_v31  ;;  %v5148_v30 = vld [vmem:[#allocation8 + $0x7f8] ss:$28 sps:$4 sm:$0xff]   ;;  %v5144_v31 = vld [vmem:[#allocation8 + $0xb70] ss:$28 sps:$4 sm:$0xff]  }
 0x263   :  { %3787 = vmatmul.mubr.bf16.vlgmr.msra.gmra.mrb[16].mxu1 %v5485_v6  ;;  %v5103_v6 = vld [vmem:[#allocation8 + $0x440] ss:$28 sps:$4 sm:$0xff]  }
 0x264   :  { %4440 = vmatpush3.bf16.msra.mxu1 %v5088_v32  ;;  %3826 = vmatprep.mubr.bf16.mxu1 %v5487_v7  ;;  %v5107_v7 = vld [vmem:[#allocation8 + $0x638] ss:$28 sps:$4 sm:$0xff]   ;;  %v5152_v32 = vld [vmem:[#allocation8 + $0x9f0] ss:$28 sps:$4 sm:$0xff]  }
 0x265   :  { %3689 = vmatpush1.bf16.msra.mxu0 %v5084_v33  ;;  %4441 = vmatprep.subr.bf16.mxu1 %v5092_v34  ;;  %v5151_v34 = vld [vmem:[#allocation8 + $0xbac] ss:$28 sps:$4 sm:$0xff]  }
 0x266   :  { %3690 = vmatprep.subr.bf16.mxu0 %v5091_v35 }
 0x268   :  { %4442 = vmatpush3.bf16.msra.mxu1 %v5093_v36  ;;  %v5153_v36 = vld [vmem:[#allocation8 + $0x830] ss:$28 sps:$4 sm:$0xff]  }
 0x269   :  { %3691 = vmatpush1.bf16.msra.mxu0 %v5089_v37  ;;  %4443 = vmatprep.subr.bf16.mxu1 %v5097_v44  ;;  %v5149_v37 = vld [vmem:[#allocation8 + $0xba8] ss:$28 sps:$4 sm:$0xff]  }
 0x26a   :  { %3692 = vmatprep.subr.bf16.mxu0 %v5096_v45  ;;  %v5157_v44 = vld [vmem:[#allocation8 + $0xa28] ss:$28 sps:$4 sm:$0xff]  }
 0x26c   :  { %4444 = vmatpush3.bf16.msra.mxu1 %v5098_v46  ;;  %v5156_v46 = vld [vmem:[#allocation8 + $0xbe4] ss:$28 sps:$4 sm:$0xff]  }
 0x26d   :  { %3693 = vmatpush1.bf16.msra.mxu0 %v5094_v48  ;;  %4445 = vmatprep.subr.bf16.mxu1 %v5102_v19 }
 0x26e   :  { %3694 = vmatprep.subr.bf16.mxu0 %v5101_v51 }
 0x270   :  { %4446 = vmatpush3.bf16.msra.mxu1 %v5103_v6  ;;  %v5158_v6 = vld [vmem:[#allocation8 + $0x868] ss:$28 sps:$4 sm:$0xff]  }
 0x271   :  { %3695 = vmatpush1.bf16.msra.mxu0 %v5099_v52  ;;  %4447 = vmatprep.subr.bf16.mxu1 %v5107_v7 }
 0x272   :  { %3696 = vmatprep.subr.bf16.mxu0 %v5106_v53  ;;  %v5162_v53 = vld [vmem:[#allocation8 + $0xa60] ss:$28 sps:$4 sm:$0xff]  }
 0x274   :  { %4448 = vmatpush3.bf16.msra.mxu1 %v5108_v54 }
 0x275   :  { %3697 = vmatpush1.bf16.msra.mxu0 %v5104_v55  ;;  %4449 = vmatprep.subr.bf16.mxu1 %v5112_v56  ;;  %v5161_v56 = vld [vmem:[#allocation8 + $0xc1c] ss:$28 sps:$4 sm:$0xff]  }
 0x276   :  { %3698 = vmatprep.subr.bf16.mxu0 %v5111_v57  ;;  %v5163_v57 = vld [vmem:[#allocation8 + $0x8a0] ss:$28 sps:$4 sm:$0xff]  }
 0x278   :  { %4450 = vmatpush3.bf16.msra.mxu1 %v5113_v59  ;;  %v5167_v59 = vld [vmem:[#allocation8 + $0xc58] ss:$28 sps:$4 sm:$0xff]  }
 0x279   :  { %3699 = vmatpush1.bf16.msra.mxu0 %v5109_v61  ;;  %4451 = vmatprep.subr.bf16.mxu1 %v5117_v62  ;;  %v5166_v61 = vld [vmem:[#allocation8 + $0xc54] ss:$28 sps:$4 sm:$0xff]  }
 0x27a   :  { %3700 = vmatprep.subr.bf16.mxu0 %v5116_v63  ;;  %v5168_v62 = vld [vmem:[#allocation8 + $0xa98] ss:$28 sps:$4 sm:$0xff]   ;;  %v5164_v63 = vld [vmem:[#allocation8 + $0xc50] ss:$28 sps:$4 sm:$0xff]  }
 0x27c   :  { %4452 = vmatpush3.bf16.msra.mxu1 %v5118_v39  ;;  %v5172_v39 = vld [vmem:[#allocation8 + $0xc90] ss:$28 sps:$4 sm:$0xff]  }
 0x27d   :  { %3701 = vmatpush1.bf16.msra.mxu0 %v5114_v0  ;;  %4453 = vmatprep.subr.bf16.mxu1 %v5122_v1  ;;  %v5171_v0 = vld [vmem:[#allocation8 + $0xc8c] ss:$28 sps:$4 sm:$0xff]  }
 0x27e   :  { %3702 = vmatprep.subr.bf16.mxu0 %v5121_v17  ;;  %v5173_v1 = vld [vmem:[#allocation8 + $0xad0] ss:$28 sps:$4 sm:$0xff]   ;;  %v5169_v17 = vld [vmem:[#allocation8 + $0xc88] ss:$28 sps:$4 sm:$0xff]  }
 0x280   :  { %4454 = vmatpush3.bf16.msra.mxu1 %v5123_v5  ;;  %v5177_v5 = vld [vmem:[#allocation8 + $0xcc8] ss:$28 sps:$4 sm:$0xff]  }
 0x281   :  { %3703 = vmatpush1.bf16.msra.mxu0 %v5119_v8  ;;  %4461 = vmatprep.subr.bf16.mxu1 %v5127_v9  ;;  %v5176_v8 = vld [vmem:[#allocation8 + $0xcc4] ss:$28 sps:$4 sm:$0xff]  }
 0x282   :  { %3713 = vmatprep.subr.bf16.mxu0 %v5126_v11  ;;  %v5178_v9 = vld [vmem:[#allocation8 + $0xb08] ss:$28 sps:$4 sm:$0xff]   ;;  %v5174_v11 = vld [vmem:[#allocation8 + $0xcc0] ss:$28 sps:$4 sm:$0xff]  }
 0x283   :  { %3827 = vmatmul.mubr.bf16.vlgmr.msra.gmra.mrb[20].mxu1 %v5478_v3  ;;  %v5142_v3 = vld [vmem:[#allocation8 + $0x980] ss:$28 sps:$4 sm:$0xff]  }
 0x284   :  { %3705 = vmatmul.mubr.bf16.vlgmr.msra.gmra.mrb[12].mxu0 %v5511_v10  ;;  %4462 = vmatpush3.bf16.msra.mxu1 %v5128_v12  ;;  %v5182_v12 = vld [vmem:[#allocation8 + $0xd00] ss:$28 sps:$4 sm:$0xff]  }
 0x285   :  { %3714 = vmatpush1.bf16.msra.mxu0 %v5124_v4  ;;  %3745 = vmatprep.mubr.bf16.mxu0 %v5514_v50  ;;  %v5181_v4 = vld [vmem:[#allocation8 + $0xcfc] ss:$28 sps:$4 sm:$0xff]  }
 0x286   :  { %3866 = vmatprep.mubr.bf16.mxu1 %v5500_v25  ;;  %3715 = vmatprep.subr.bf16.mxu0 %v5131_v13  ;;  %v5548_v25 = vld [vmem:[#allocation10] sm:$0xff]  ;;  %v5179_v13 = vld [vmem:[#allocation8 + $0xcf8] ss:$28 sps:$4 sm:$0xff]  }
 0x287   :  { %4463 = vmatprep.subr.bf16.mxu1 %v5132_v15  ;;  %v926_v33 = vrot.slane %v5548_v25, %v102_v40  ;;  %v930_v35 = vrot.slane %v5548_v25, %v106_v42  ;;  %v5154_v42 = vld [vmem:[#allocation8 + $0xbe0] ss:$28 sps:$4 sm:$0xff]   ;;  %v5186_v15 = vld [vmem:[#allocation8 + $0xd34] ss:$28 sps:$4 sm:$0xff]  }
 0x288   :  { %4464 = vmatpush3.bf16.msra.mxu1 %v5133_v16  ;;  %v5188_v16 = vld [vmem:[#allocation8 + $0xb78] ss:$28 sps:$4 sm:$0xff]  }
 0x289   :  { %3716 = vmatpush1.bf16.msra.mxu0 %v5129_v18  ;;  %4465 = vmatprep.subr.bf16.mxu1 %v5137_v20  ;;  %v3297_v45 = vadd.f32 %v5534_v58, %v926_v33  ;;  %v3299_v48 = vadd.f32 %v5536_v60, %v930_v35  ;;  %v5159_v60 = vld [vmem:[#allocation8 + $0xc18] ss:$28 sps:$4 sm:$0xff]   ;;  %v5184_v18 = vld [vmem:[#allocation8 + $0xd30] ss:$28 sps:$4 sm:$0xff]   ;;  %v938_v33 = vrot.slane %v5548_v25, %v114_v43 }
 0x28a   :  { %3717 = vmatprep.subr.bf16.mxu0 %v5136_v21  ;;  %v5192_v20 = vld [vmem:[#allocation8 + $0xd70] ss:$28 sps:$4 sm:$0xff]  }
 0x28b   :  { %v5191_v21 = vld [vmem:[#allocation8 + $0xd6c] ss:$28 sps:$4 sm:$0xff]  }
 0x28c   :  { %4466 = vmatpush3.bf16.msra.mxu1 %v5138_v22  ;;  %v5193_v22 = vld [vmem:[#allocation8 + $0xbb0] ss:$28 sps:$4 sm:$0xff]  }
 0x28d   :  { %3718 = vmatpush1.bf16.msra.mxu0 %v5134_v23  ;;  %4467 = vmatprep.subr.bf16.mxu1 %v5142_v3  ;;  %v5189_v23 = vld [vmem:[#allocation8 + $0xd68] ss:$28 sps:$4 sm:$0xff]  }
 0x28e   :  { %3719 = vmatprep.subr.bf16.mxu0 %v5141_v24  ;;  %v5197_v3 = vld [vmem:[#allocation8 + $0xda8] ss:$28 sps:$4 sm:$0xff]  }
 0x28f   :  { %v5196_v24 = vld [vmem:[#allocation8 + $0xda4] ss:$28 sps:$4 sm:$0xff]  }
 0x290   :  { %4468 = vmatpush3.bf16.msra.mxu1 %v5143_v26  ;;  %v5198_v26 = vld [vmem:[#allocation8 + $0xbe8] ss:$28 sps:$4 sm:$0xff]  }
 0x291   :  { %3720 = vmatpush1.bf16.msra.mxu0 %v5139_v27  ;;  %4469 = vmatprep.subr.bf16.mxu1 %v5147_v28  ;;  %v5194_v27 = vld [vmem:[#allocation8 + $0xda0] ss:$28 sps:$4 sm:$0xff]  }
 0x292   :  { %3721 = vmatprep.subr.bf16.mxu0 %v5146_v29  ;;  %v5202_v28 = vld [vmem:[#allocation8 + $0xde0] ss:$28 sps:$4 sm:$0xff]  }
 0x293   :  { %v5201_v29 = vld [vmem:[#allocation8 + $0xddc] ss:$28 sps:$4 sm:$0xff]  }
 0x294   :  { %4470 = vmatpush3.bf16.msra.mxu1 %v5148_v30  ;;  %v5203_v30 = vld [vmem:[#allocation8 + $0xc20] ss:$28 sps:$4 sm:$0xff]  }
 0x295   :  { %3722 = vmatpush1.bf16.msra.mxu0 %v5144_v31  ;;  %4471 = vmatprep.subr.bf16.mxu1 %v5152_v32  ;;  %v5199_v31 = vld [vmem:[#allocation8 + $0xdd8] ss:$28 sps:$4 sm:$0xff]   ;;  %v934_v32 = vrot.slane %v5548_v25, %v110_v41  ;;  %v950_v41 = vrot.slane %v5548_v25, %v126_v47  ;;  %v946_v47 = vrot.slane %v5548_v25, %v122_v49 }
 0x296   :  { %3723 = vmatprep.subr.bf16.mxu0 %v5151_v34  ;;  %v3419_v19 = vpop.f32.mrb[8].mxu0 }
 0x297   :  { %v4506_v40 = vadd.f32 %v3419_v19, %v3297_v45  ;;  %v3421_v51 = vpop.f32.mrb[9].mxu0 }
 0x298   :  { %4472 = vmatpush3.bf16.msra.mxu1 %v5153_v36  ;;  %v4508_v52 = vadd.f32 %v3421_v51, %v3299_v48  ;;  %v3423_v7 = vpop.f32.mrb[10].mxu0 }
 0x299   :  { %3724 = vmatpush1.bf16.msra.mxu0 %v5149_v37  ;;  %4473 = vmatprep.subr.bf16.mxu1 %v5157_v44  ;;  %v3914_v54 = vmax.f32 %v4506_v40, 0.0  ;;  %v3424_v55 = vpop.f32.mrb[11].mxu0 }
 0x29a   :  { %3725 = vmatprep.subr.bf16.mxu0 %v5156_v46  ;;  %v3915_v58 = vmax.f32 %v4508_v52, 0.0 }
 0x29b   :  { %3921 = vst [vmem:[#allocation11] sm:$0xff] %v3914_v54 }
 0x29c   :  { %4474 = vmatpush3.bf16.msra.mxu1 %v5158_v6  ;;  %3922 = vst [vmem:[#allocation11 + $0x8] sm:$0xff] %v3915_v58 }
 0x29d   :  { %3726 = vmatpush1.bf16.msra.mxu0 %v5154_v42  ;;  %4475 = vmatprep.subr.bf16.mxu1 %v5162_v53 }
 0x29e   :  { %3727 = vmatprep.subr.bf16.mxu0 %v5161_v56 }
 0x2a0   :  { %4476 = vmatpush3.bf16.msra.mxu1 %v5163_v57 }
 0x2a1   :  { %3728 = vmatpush1.bf16.msra.mxu0 %v5159_v60  ;;  %4483 = vmatprep.subr.bf16.mxu1 %v5167_v59 }
 0x2a2   :  { %3729 = vmatprep.subr.bf16.mxu0 %v5166_v61 }
 0x2a3   :  { %3867 = vmatmul.mubr.bf16.vlgmr.msra.gmra.mrb[24].mxu1 %v5511_v10  ;;  %v5183_v10 = vld [vmem:[#allocation8 + $0xb40] ss:$28 sps:$4 sm:$0xff]  }
 0x2a4   :  { %4484 = vmatpush3.bf16.msra.mxu1 %v5168_v62  ;;  %3906 = vmatprep.mubr.bf16.mxu1 %v5514_v50  ;;  %v5187_v50 = vld [vmem:[#allocation8 + $0xd38] ss:$28 sps:$4 sm:$0xff]   ;;  %v942_v62 = vrot.slane %v5548_v25, %v118_v14 }
 0x2a5   :  { %3730 = vmatpush1.bf16.msra.mxu0 %v5164_v63  ;;  %4485 = vmatprep.subr.bf16.mxu1 %v5172_v39 }
 0x2a6   :  { %3731 = vmatprep.subr.bf16.mxu0 %v5171_v0 }
 0x2a8   :  { %4486 = vmatpush3.bf16.msra.mxu1 %v5173_v1 }
 0x2a9   :  { %3732 = vmatpush1.bf16.msra.mxu0 %v5169_v17  ;;  %4487 = vmatprep.subr.bf16.mxu1 %v5177_v5 }
 0x2aa   :  { %3733 = vmatprep.subr.bf16.mxu0 %v5176_v8 }
 0x2ac   :  { %4488 = vmatpush3.bf16.msra.mxu1 %v5178_v9 }
 0x2ad   :  { %3734 = vmatpush1.bf16.msra.mxu0 %v5174_v11  ;;  %4489 = vmatprep.subr.bf16.mxu1 %v5182_v12 }
 0x2ae   :  { %3735 = vmatprep.subr.bf16.mxu0 %v5181_v4 }
 0x2b0   :  { %4490 = vmatpush3.bf16.msra.mxu1 %v5183_v10 }
 0x2b1   :  { %3736 = vmatpush1.bf16.msra.mxu0 %v5179_v13  ;;  %4491 = vmatprep.subr.bf16.mxu1 %v5187_v50 }
 0x2b2   :  { %3737 = vmatprep.subr.bf16.mxu0 %v5186_v15 }
 0x2b4   :  { %4492 = vmatpush3.bf16.msra.mxu1 %v5188_v16 }
 0x2b5   :  { %3738 = vmatpush1.bf16.msra.mxu0 %v5184_v18  ;;  %4493 = vmatprep.subr.bf16.mxu1 %v5192_v20 }
 0x2b6   :  { %3739 = vmatprep.subr.bf16.mxu0 %v5191_v21 }
 0x2b8   :  { %4494 = vmatpush3.bf16.msra.mxu1 %v5193_v22 }
 0x2b9   :  { %3740 = vmatpush1.bf16.msra.mxu0 %v5189_v23  ;;  %4495 = vmatprep.subr.bf16.mxu1 %v5197_v3 }
 0x2ba   :  { %3741 = vmatprep.subr.bf16.mxu0 %v5196_v24 }
 0x2bc   :  { %4496 = vmatpush3.bf16.msra.mxu1 %v5198_v26 }
 0x2bd   :  { %3742 = vmatpush1.bf16.msra.mxu0 %v5194_v27  ;;  %4497 = vmatprep.subr.bf16.mxu1 %v5202_v28 }
 0x2be   :  { %3743 = vmatprep.subr.bf16.mxu0 %v5201_v29 }
 0x2c0   :  { %4498 = vmatpush3.bf16.msra.mxu1 %v5203_v30 }
 0x2c1   :  { %3744 = vmatpush1.bf16.msra.mxu0 %v5199_v31 }
 0x2c3   :  { %3907 = vmatmul.mubr.bf16.vlgmr.msra.gmra.mrb[28].mxu1 %v5524_v2 }
 0x2c4   :  { %3746 = vmatmul.mubr.bf16.vlgmr.msra.gmra.mrb[12].mxu0 %v5524_v2 }
 0x316   :  { %v3583_v34 = vpop.f32.mrb[12].mxu1 }
 0x317   :  { %v4509_v35 = vadd.f32 %v3583_v34, %v934_v32  ;;  %v3585_v36 = vpop.f32.mrb[13].mxu1 }
 0x318   :  { %v4510_v37 = vadd.f32 %v3585_v36, %v938_v33  ;;  %v3587_v44 = vpop.f32.mrb[14].mxu1 }
 0x319   :  { %v3916_v45 = vmax.f32 %v4509_v35, 0.0  ;;  %v3588_v46 = vpop.f32.mrb[15].mxu1 }
 0x31a   :  { %v3917_v48 = vmax.f32 %v4510_v37, 0.0 }
 0x31b   :  { %3923 = vst [vmem:[#allocation11 + $0x10] sm:$0xff] %v3916_v45 }
 0x31c   :  { %3924 = vst [vmem:[#allocation11 + $0x18] sm:$0xff] %v3917_v48 }
 0x336   :  { %v4433_v19 = vpop.f32.mrb[16].mxu1 }
 0x337   :  { %v4434_v2 = vpop.f32.mrb[17].mxu1 }
 0x338   :  { %v4435_v40 = vadd.f32 %v4434_v2, %v4433_v19  ;;  %v4436_v51 = vpop.f32.mrb[18].mxu1 }
 0x339   :  { %v4437_v6 = vpop.f32.mrb[19].mxu1 }
 0x33a   :  { %v3789_v7 = vadd.f32 %v4435_v40, %v950_v41 }
 0x356   :  { %v4455_v43 = vpop.f32.mrb[20].mxu1 }
 0x357   :  { %v4456_v52 = vpop.f32.mrb[21].mxu1 }
 0x358   :  { %v4457_v42 = vadd.f32 %v4456_v52, %v4455_v43  ;;  %v4458_v53 = vpop.f32.mrb[22].mxu1 }
 0x359   :  { %v4459_v54 = vpop.f32.mrb[23].mxu1 }
 0x35a   :  { %v3829_v55 = vadd.f32 %v4457_v42, %v3789_v7 }
 0x376   :  { %v4477_v56 = vpop.f32.mrb[24].mxu1 }
 0x377   :  { %v4478_v58 = vpop.f32.mrb[25].mxu1 }
 0x378   :  { %v4479_v57 = vadd.f32 %v4478_v58, %v4477_v56  ;;  %v4480_v60 = vpop.f32.mrb[26].mxu1 }
 0x379   :  { %v4481_v59 = vpop.f32.mrb[27].mxu1 }
 0x37a   :  { %v3869_v61 = vadd.f32 %v4479_v57, %v3829_v55 }
 0x396   :  { %v4499_v63 = vpop.f32.mrb[28].mxu1 }
 0x397   :  { %v3747_v39 = vpop.f32.mrb[12].mxu0  ;;  %v4500_v0 = vpop.f32.mrb[29].mxu1 }
 0x398   :  { %v4511_v1 = vadd.f32 %v3747_v39, %v942_v62  ;;  %v3749_v17 = vpop.f32.mrb[13].mxu0  ;;  %v4501_v5 = vadd.f32 %v4500_v0, %v4499_v63  ;;  %v4502_v8 = vpop.f32.mrb[30].mxu1 }
 0x399   :  { %v4512_v9 = vadd.f32 %v3749_v17, %v946_v47  ;;  %v3751_v11 = vpop.f32.mrb[14].mxu0  ;;  %v4503_v12 = vpop.f32.mrb[31].mxu1 }
 0x39a   :  { %v3918_v4 = vmax.f32 %v4511_v1, 0.0  ;;  %v3909_v10 = vadd.f32 %v4501_v5, %v3869_v61  ;;  %v3752_v13 = vpop.f32.mrb[15].mxu0 }
 0x39b   :  { %v3919_v14 = vmax.f32 %v4512_v9, 0.0 }
 0x39c   :  { %3925 = vst [vmem:[#allocation11 + $0x20] sm:$0xff] %v3918_v4  ;;  %v3920_v38 = vmax.f32 %v3909_v10, 0.0 }
 0x39d   :  { %3926 = vst [vmem:[#allocation11 + $0x28] sm:$0xff] %v3919_v14 }
 0x39e   :  { %3927 = vst [vmem:[#allocation11 + $0x30] sm:$0xff] %v3920_v38 }
 0x39f   :  { %5325 = shalt.err (!%p5322_p2)
}
 0x3a0   :  { %s5326_s6 = scalar_lea.hbm %s5594_s5, 896 }
 0x3a1   :  { %p5327_p3 = scmp.ne.s32.totalorder %s5594_s5, %s5326_s6  ;;  %p5330_p4 = scmp.lt.u32.totalorder %s5326_s6, %s5594_s5 }
 0x3a3   :  { %p5332_p5 = pnand %p5330_p4, %p5327_p3 }
 0x3a5   :  { %5335 = shalt.err (!%p5332_p5)
}
 0x3a6   :  { %3937 = dma.vmem_to_hbm [thread:$0]  %s3935_s28, 896, %s5594_s5, [#allocation4]  }
 0x3a7   :  { %5342 = dma.done.wait [#allocation4], 896  }
 0x3a8   :  { %5343 = vsyncadd [#allocation4], 4294966400 }
 0x3a9   :  { %3941 = vsyncpa [#allocation3], 1 }
 0x3aa   :  { %3942 = vsyncpa [#allocation6], 1 }
 0x3ab   :  { %3943 = vsyncpa [#allocation9], 1 }
 0x3ac   :  { %3944 = vsyncpa [#allocation4], 1 }

</bundles_post_ra>
